<compile_context>
chip_gen: v7x
topology: tpu7x:2x2x1
jax: 0.10.0
libtpu: 0.0.40
codegen_flags: <defaults>
</compile_context>

<pallas_src>
from typing import Any, NamedTuple, Tuple

import jax
import jax.numpy as jnp
from jax.experimental import pallas as pl
from jax.experimental.pallas import tpu as pltpu

_LANE = 128      # lane width (last dim)
_SUBLANE = 8     # sublane width (second-to-last dim)


def _round_up(n, m):
    return ((n + m - 1) // m) * m


class PreparedMLPParams(NamedTuple):
    """Lane-padded, pre-cast (w, b) pairs.  Build once with prepare_mlp_params."""
    layers: Tuple[Tuple[jax.Array, jax.Array], ...]
    input_size: int
    output_size: int
    compute_dtype: Any


def prepare_mlp_params(params, compute_dtype=jnp.float32):
    """Pad every layer's (w, b) to lane-dense shapes and cast the weights.

    Call ONCE (e.g. at module construction); re-padding/casting the weights
    inside every forward costs a full extra HBM pass over the parameters.

    Layer 0's input (K) dim is intentionally left un-padded (a full-extent
    block along that dim is legal even if it is not a multiple of 128), so
    the wrapper never materializes a feature-padded copy of x.  All output
    dims are padded to 128; padded weight rows/cols and bias lanes are zero
    and ELU(0) = 0, so padded FEATURE lanes stay zero through the stack
    (padded batch rows do not, but they are sliced off by the wrapper).
    """
    layers = []
    for li, (w, b) in enumerate(params):
        din, dout = w.shape
        din_p = din if li == 0 else _round_up(din, _LANE)
        dout_p = _round_up(dout, _LANE)
        w_p = jnp.zeros((din_p, dout_p), compute_dtype)
        w_p = w_p.at[:din, :dout].set(w.astype(compute_dtype))
        # Bias stays f32: it is added to the f32 accumulator.
        b_p = jnp.zeros((1, dout_p), jnp.float32)
        b_p = b_p.at[:, :dout].set(jnp.reshape(b, (1, -1)).astype(jnp.float32))
        layers.append((w_p, b_p))
    return PreparedMLPParams(
        layers=tuple(layers),
        input_size=params[0][0].shape[0],
        output_size=params[-1][0].shape[1],
        compute_dtype=jnp.dtype(compute_dtype),
    )


def _fused_mlp_kernel(x_ref, *refs):
    """One grid step: push a (TB, Din) batch tile through ALL layers.

    refs = (w0, b0, w1, b1, ..., o_ref).  Matmuls accumulate in f32 on the
    MXU; the ELU(alpha=1) epilogue is always f32 (legal on v5e, which has no
    bf16 VPU/EUP).  Inter-layer activations are cast back to the weight dtype
    once per layer boundary so bf16 operands feed the MXU directly.
    """
    o_ref = refs[-1]
    wb = refs[:-1]
    n_layers = len(wb) // 2

    h = x_ref[...]                                  # already in compute dtype
    for li in range(n_layers):
        w = wb[2 * li][...]                         # (din[_p], dout_p)
        b = wb[2 * li + 1][...]                     # (1, dout_p), f32
        prec = jax.lax.Precision.HIGHEST if w.dtype == jnp.float32 else None
        y = jnp.dot(h, w, preferred_element_type=jnp.float32, precision=prec)
        y = y + b
        # ELU(alpha=1): y if y > 0 else exp(y) - 1.  min() keeps the dead
        # branch finite; difference vs expm1 near 0 is ~1e-7 (f32 rounding).
        act = jnp.where(y > 0.0, y, jnp.exp(jnp.minimum(y, 0.0)) - 1.0)
        if li + 1 < n_layers:
            h = act.astype(w.dtype)                 # one cast per layer boundary
        else:
            o_ref[...] = act.astype(o_ref.dtype)


def mlp_base_forward(params, net_input, *, compute_dtype=jnp.float32,
                     batch_tile=256, out_dtype=jnp.float32):
    """Equivalent of MLPBase.forward(net_input): fused Linear+ELU stack.

    `params` may be raw [(w, b), ...] (w as [in, out]) or a PreparedMLPParams
    from prepare_mlp_params (preferred: pad/cast once, not per call).
    compute_dtype=jnp.bfloat16 halves weight/activation DMA bytes and feeds
    the bf16 MXU on v5e/v6e/v7x; keep f32 (default) for exact PyTorch parity.
    batch_tile: max rows per grid step; 256 default (safe on v5e), consider
    512 on v6e/v7x for large batches.
    """
    if isinstance(params, PreparedMLPParams):
        prepared = params
    else:
        prepared = prepare_mlp_params(params, compute_dtype)
    cdtype = prepared.compute_dtype
    out_dtype = jnp.dtype(out_dtype)

    x = jnp.asarray(net_input)
    squeeze = (x.ndim == 1)
    if squeeze:
        x = x[None, :]
    B, Din = x.shape
    if Din != prepared.input_size:
        raise ValueError(f"expected input size {prepared.input_size}, got {Din}")
    Dout = prepared.output_size
    Dout_p = prepared.layers[-1][0].shape[1]

    # --- batch tiling -------------------------------------------------------
    if B <= 2 * _SUBLANE:
        # Tiny batch: a single sublane-aligned tile; splitting isn't worth it.
        TB = _round_up(B, _SUBLANE)
    else:
        # Guarantee >= 2 grid steps so v7x's two TensorCores both get work,
        # capped at batch_tile to amortize per-step overhead without blowing
        # the vreg file / VMEM.
        TB = min(batch_tile, _round_up(-(-B // 2), _SUBLANE))
    B_p = _round_up(B, TB)
    num_tiles = B_p // TB

    x_in = x.astype(cdtype)
    if B_p != B:
        # Pad only the batch dim (feature dim stays un-padded).  Padded rows
        # compute ELU(bias) garbage that is sliced off below.
        x_in = jnp.zeros((B_p, Din), cdtype).at[:B].set(x_in)

    # --- explicit VMEM budget (v7x physical VMEM is only 64 MiB) ------------
    wb_bytes = sum(w.size * w.dtype.itemsize + b.size * b.dtype.itemsize
                   for w, b in prepared.layers)
    x_tile_bytes = TB * Din * cdtype.itemsize
    out_tile_bytes = TB * Dout_p * out_dtype.itemsize
    max_dout_p = max(w.shape[1] for w, _ in prepared.layers)
    inter_bytes = 2 * TB * max_dout_p * 4                 # f32 intermediates
    needed = wb_bytes + 2 * x_tile_bytes + 2 * out_tile_bytes + inter_bytes
    # 2x head-room for compiler scratch/spills, clamped at v7x physical VMEM.
    # If the resident weight stack ever approaches this budget, switch the
    # weights to bf16 or split the layer stack into two pallas_calls.
    vmem_limit = int(min(max(2 * needed + (4 << 20), 32 << 20), 64 << 20))

    compiler_params = pltpu.CompilerParams(
        dimension_semantics=("parallel",),
        vmem_limit_bytes=vmem_limit,
    )

    flat_wb = []
    for w_p, b_p in prepared.layers:
        flat_wb.append(w_p)
        flat_wb.append(b_p)

    def _build_and_call(single_buffer_weights):
        # Weights/biases are grid-invariant (index_map -> (0, 0)); a single
        # buffer keeps them VMEM-resident with no wasted second buffer.
        wb_kwargs = (dict(pipeline_mode=pl.Buffered(1))
                     if single_buffer_weights else {})
        in_specs = [pl.BlockSpec((TB, Din), lambda i: (i, 0))]
        for w_p, b_p in prepared.layers:
            in_specs.append(pl.BlockSpec(w_p.shape, lambda i: (0, 0), **wb_kwargs))
            in_specs.append(pl.BlockSpec(b_p.shape, lambda i: (0, 0), **wb_kwargs))
        return pl.pallas_call(
            _fused_mlp_kernel,
            out_shape=jax.ShapeDtypeStruct((B_p, Dout_p), out_dtype),
            grid=(num_tiles,),
            in_specs=in_specs,
            out_specs=pl.BlockSpec((TB, Dout_p), lambda i: (i, 0)),
            compiler_params=compiler_params,
        )(x_in, *flat_wb)

    try:
        out_p = _build_and_call(True)
    except Exception:
        # Fallback for Pallas builds that reject Buffered(1): default double
        # buffering (only costs extra VMEM for the small resident weights).
        out_p = _build_and_call(False)

    out = out_p[:B, :Dout]
    if squeeze:
        out = out[0]
    return out


def init_mlp_params(key, input_size, hidden_sizes):
    """Deterministic init mimicking nn.Linear's U(-1/sqrt(fan_in), 1/sqrt(fan_in))."""
    params = []
    prev = input_size
    for h in hidden_sizes:
        key, kw, kb = jax.random.split(key, 3)
        bound = 1.0 / (prev ** 0.5)
        w = jax.random.uniform(kw, (prev, h), jnp.float32, -bound, bound)
        b = jax.random.uniform(kb, (h,), jnp.float32, -bound, bound)
        params.append((w, b))
        prev = h
    return params


def _reference_mlp(params, x):
    """Pure-JAX reference (Linear + ELU(alpha=1)), true-f32 matmuls."""
    h = x
    for w, b in params:
        y = jnp.dot(h, w, precision=jax.lax.Precision.HIGHEST) + b
        h = jnp.where(y > 0.0, y, jnp.expm1(y))
    return h


if __name__ == "__main__":
    key = jax.random.PRNGKey(0)
    key, kx = jax.random.split(key)

    # MLPBase(input_shape=(32,), hidden_sizes=(64, 32), activation='elu')
    input_shape = (32,)
    hidden_sizes = (64, 32)
    batch = 8

    params = init_mlp_params(key, input_shape[0], hidden_sizes)
    x = jax.random.normal(kx, (batch, input_shape[0]), dtype=jnp.float32)
    ref = _reference_mlp(params, x)

    # f32 path: exact parity with the PyTorch f32 module.
    prepared_f32 = prepare_mlp_params(params, compute_dtype=jnp.float32)
    out = mlp_base_forward(prepared_f32, x)
    jax.block_until_ready(out)
    assert out.shape == (batch, hidden_sizes[-1])
    assert jnp.allclose(out, ref, atol=1e-5, rtol=1e-5), "f32 mismatch vs reference"

    # bf16 operand path (bf16 MXU fast path on v5e/v6e/v7x), f32 accumulation,
    # bf16 output store.
    prepared_bf16 = prepare_mlp_params(params, compute_dtype=jnp.bfloat16)
    out_bf16 = mlp_base_forward(prepared_bf16, x, out_dtype=jnp.bfloat16)
    jax.block_until_ready(out_bf16)
    assert out_bf16.dtype == jnp.bfloat16
    assert jnp.allclose(out_bf16.astype(jnp.float32), ref, atol=3e-2, rtol=3e-2), \
        "bf16 mismatch vs reference"

    # Larger batch: exercises the multi-tile grid (>= 2 steps -> both v7x TCs)
    # plus batch padding.
    key, kb = jax.random.split(key)
    xb = jax.random.normal(kb, (300, input_shape[0]), dtype=jnp.float32)
    ob = mlp_base_forward(prepared_f32, xb)
    jax.block_until_ready(ob)
    assert ob.shape == (300, hidden_sizes[-1])
    assert jnp.allclose(ob, _reference_mlp(params, xb), atol=1e-5, rtol=1e-5), \
        "f32 large-batch mismatch vs reference"

    print("KERNEL_OK")
</pallas_src>

<mosaic_0001>
module attributes {stable_mosaic.version = 11 : i64} {
  func.func @_fused_mlp_kernel(%arg0: i32, %arg1: memref<8x32xf32, #tpu.memory_space<vmem>>, %arg2: memref<32x128xf32, #tpu.memory_space<vmem>>, %arg3: memref<1x128xf32, #tpu.memory_space<vmem>>, %arg4: memref<128x128xf32, #tpu.memory_space<vmem>>, %arg5: memref<1x128xf32, #tpu.memory_space<vmem>>, %arg6: memref<8x128xf32, #tpu.memory_space<vmem>>) attributes {dimension_semantics = [#tpu.dimension_semantics<parallel>], iteration_bounds = array<i64: 1>, scalar_prefetch = 0 : i64, scratch_operands = 0 : i64, tpu.core_type = #tpu.core_type<tc>, window_params = [{transform_indices = @transform_0, window_bounds = array<i64: 8, 32>}, {pipeline_mode = #tpu.pipeline_mode<synchronous>, transform_indices = @transform_1, window_bounds = array<i64: 32, 128>}, {pipeline_mode = #tpu.pipeline_mode<synchronous>, transform_indices = @transform_2, window_bounds = array<i64: 1, 128>}, {pipeline_mode = #tpu.pipeline_mode<synchronous>, transform_indices = @transform_3, window_bounds = array<i64: 128, 128>}, {pipeline_mode = #tpu.pipeline_mode<synchronous>, transform_indices = @transform_4, window_bounds = array<i64: 1, 128>}, {transform_indices = @transform_5, window_bounds = array<i64: 8, 128>}]} {
    %c0 = arith.constant 0 : index
    %c0_0 = arith.constant 0 : index
    %0 = vector.load %arg1[%c0, %c0_0] : memref<8x32xf32, #tpu.memory_space<vmem>>, vector<8x32xf32>
    %c0_1 = arith.constant 0 : index
    %c0_2 = arith.constant 0 : index
    %1 = vector.load %arg2[%c0_1, %c0_2] : memref<32x128xf32, #tpu.memory_space<vmem>>, vector<32x128xf32>
    %c0_3 = arith.constant 0 : index
    %c0_4 = arith.constant 0 : index
    %2 = vector.load %arg3[%c0_3, %c0_4] : memref<1x128xf32, #tpu.memory_space<vmem>>, vector<1x128xf32>
    %cst = arith.constant dense<0.000000e+00> : vector<8x128xf32>
    %3 = tpu.matmul %0, %1, %cst {dimension_numbers = #tpu.dot_dimension_numbers<[1], [0], [0], [1], [0, 0, 1, 1], [], []>, precision = #tpu.contract_precision<fp32>} : vector<8x32xf32>, vector<32x128xf32>, vector<8x128xf32> -> vector<8x128xf32>
    %4 = vector.broadcast %2 : vector<1x128xf32> to vector<8x128xf32>
    %5 = arith.addf %3, %4 : vector<8x128xf32>
    %cst_5 = arith.constant 0.000000e+00 : f32
    %6 = vector.broadcast %cst_5 : f32 to vector<8x128xf32>
    %7 = arith.cmpf ogt, %5, %6 : vector<8x128xf32>
    %cst_6 = arith.constant 0.000000e+00 : f32
    %8 = vector.broadcast %cst_6 : f32 to vector<8x128xf32>
    %9 = arith.minimumf %5, %8 : vector<8x128xf32>
    %10 = math.exp %9 : vector<8x128xf32>
    %cst_7 = arith.constant 1.000000e+00 : f32
    %11 = vector.broadcast %cst_7 : f32 to vector<8x128xf32>
    %12 = arith.subf %10, %11 : vector<8x128xf32>
    %13 = arith.select %7, %5, %12 : vector<8x128xi1>, vector<8x128xf32>
    %c0_8 = arith.constant 0 : index
    %c0_9 = arith.constant 0 : index
    %14 = vector.load %arg4[%c0_8, %c0_9] : memref<128x128xf32, #tpu.memory_space<vmem>>, vector<128x128xf32>
    %c0_10 = arith.constant 0 : index
    %c0_11 = arith.constant 0 : index
    %15 = vector.load %arg5[%c0_10, %c0_11] : memref<1x128xf32, #tpu.memory_space<vmem>>, vector<1x128xf32>
    %cst_12 = arith.constant dense<0.000000e+00> : vector<8x128xf32>
    %16 = tpu.matmul %13, %14, %cst_12 {dimension_numbers = #tpu.dot_dimension_numbers<[1], [0], [0], [1], [0, 0, 1, 1], [], []>, precision = #tpu.contract_precision<fp32>} : vector<8x128xf32>, vector<128x128xf32>, vector<8x128xf32> -> vector<8x128xf32>
    %17 = vector.broadcast %15 : vector<1x128xf32> to vector<8x128xf32>
    %18 = arith.addf %16, %17 : vector<8x128xf32>
    %cst_13 = arith.constant 0.000000e+00 : f32
    %19 = vector.broadcast %cst_13 : f32 to vector<8x128xf32>
    %20 = arith.cmpf ogt, %18, %19 : vector<8x128xf32>
    %cst_14 = arith.constant 0.000000e+00 : f32
    %21 = vector.broadcast %cst_14 : f32 to vector<8x128xf32>
    %22 = arith.minimumf %18, %21 : vector<8x128xf32>
    %23 = math.exp %22 : vector<8x128xf32>
    %cst_15 = arith.constant 1.000000e+00 : f32
    %24 = vector.broadcast %cst_15 : f32 to vector<8x128xf32>
    %25 = arith.subf %23, %24 : vector<8x128xf32>
    %26 = arith.select %20, %18, %25 : vector<8x128xi1>, vector<8x128xf32>
    %c0_16 = arith.constant 0 : index
    %c0_17 = arith.constant 0 : index
    %27 = vector.load %arg6[%c0_16, %c0_17] : memref<8x128xf32, #tpu.memory_space<vmem>>, vector<8x128xf32>
    tpu.vector_store %arg6[%c0_16, %c0_17], %26 {strides = array<i32>} : memref<8x128xf32, #tpu.memory_space<vmem>>, vector<8x128xf32>,
    return
  }
  func.func @transform_0(%arg0: i32) -> (i32, i32) {
    %c0_i32 = arith.constant 0 : i32
    %c0_i32_0 = arith.constant 0 : i32
    return %arg0, %c0_i32 : i32, i32
  }
  func.func @transform_1(%arg0: i32) -> (i32, i32) {
    %c0_i32 = arith.constant 0 : i32
    %c0_i32_0 = arith.constant 0 : i32
    %c0_i32_1 = arith.constant 0 : i32
    return %c0_i32, %c0_i32_0 : i32, i32
  }
  func.func @transform_2(%arg0: i32) -> (i32, i32) {
    %c0_i32 = arith.constant 0 : i32
    %c0_i32_0 = arith.constant 0 : i32
    %c0_i32_1 = arith.constant 0 : i32
    return %c0_i32, %c0_i32_0 : i32, i32
  }
  func.func @transform_3(%arg0: i32) -> (i32, i32) {
    %c0_i32 = arith.constant 0 : i32
    %c0_i32_0 = arith.constant 0 : i32
    %c0_i32_1 = arith.constant 0 : i32
    return %c0_i32, %c0_i32_0 : i32, i32
  }
  func.func @transform_4(%arg0: i32) -> (i32, i32) {
    %c0_i32 = arith.constant 0 : i32
    %c0_i32_0 = arith.constant 0 : i32
    %c0_i32_1 = arith.constant 0 : i32
    return %c0_i32, %c0_i32_0 : i32, i32
  }
  func.func @transform_5(%arg0: i32) -> (i32, i32) {
    %c0_i32 = arith.constant 0 : i32
    %c0_i32_0 = arith.constant 0 : i32
    return %arg0, %c0_i32 : i32, i32
  }
}

module attributes {stable_mosaic.version = 11 : i64} {
  func.func @_fused_mlp_kernel(%arg0: i32, %arg1: memref<8x32xf32, #tpu.memory_space<vmem>>, %arg2: memref<32x128xf32, #tpu.memory_space<vmem>>, %arg3: memref<1x128xf32, #tpu.memory_space<vmem>>, %arg4: memref<128x128xf32, #tpu.memory_space<vmem>>, %arg5: memref<1x128xf32, #tpu.memory_space<vmem>>, %arg6: memref<8x128xf32, #tpu.memory_space<vmem>>) attributes {dimension_semantics = [#tpu.dimension_semantics<parallel>], iteration_bounds = array<i64: 1>, scalar_prefetch = 0 : i64, scratch_operands = 0 : i64, tpu.core_type = #tpu.core_type<tc>, window_params = [{transform_indices = @transform_0, window_bounds = array<i64: 8, 32>}, {pipeline_mode = #tpu.pipeline_mode<synchronous>, transform_indices = @transform_1, window_bounds = array<i64: 32, 128>}, {pipeline_mode = #tpu.pipeline_mode<synchronous>, transform_indices = @transform_2, window_bounds = array<i64: 1, 128>}, {pipeline_mode = #tpu.pipeline_mode<synchronous>, transform_indices = @transform_3, window_bounds = array<i64: 128, 128>}, {pipeline_mode = #tpu.pipeline_mode<synchronous>, transform_indices = @transform_4, window_bounds = array<i64: 1, 128>}, {transform_indices = @transform_5, window_bounds = array<i64: 8, 128>}]} {
    %c0 = arith.constant 0 : index
    %c0_0 = arith.constant 0 : index
    %0 = vector.load %arg1[%c0, %c0_0] : memref<8x32xf32, #tpu.memory_space<vmem>>, vector<8x32xf32>
    %c0_1 = arith.constant 0 : index
    %c0_2 = arith.constant 0 : index
    %1 = vector.load %arg2[%c0_1, %c0_2] : memref<32x128xf32, #tpu.memory_space<vmem>>, vector<32x128xf32>
    %c0_3 = arith.constant 0 : index
    %c0_4 = arith.constant 0 : index
    %2 = vector.load %arg3[%c0_3, %c0_4] : memref<1x128xf32, #tpu.memory_space<vmem>>, vector<1x128xf32>
    %cst = arith.constant dense<0.000000e+00> : vector<8x128xf32>
    %3 = tpu.matmul %0, %1, %cst {dimension_numbers = #tpu.dot_dimension_numbers<[1], [0], [0], [1], [0, 0, 1, 1], [], []>, precision = #tpu.contract_precision<fp32>} : vector<8x32xf32>, vector<32x128xf32>, vector<8x128xf32> -> vector<8x128xf32>
    %4 = vector.broadcast %2 : vector<1x128xf32> to vector<8x128xf32>
    %5 = arith.addf %3, %4 : vector<8x128xf32>
    %cst_5 = arith.constant 0.000000e+00 : f32
    %6 = vector.broadcast %cst_5 : f32 to vector<8x128xf32>
    %7 = arith.cmpf ogt, %5, %6 : vector<8x128xf32>
    %cst_6 = arith.constant 0.000000e+00 : f32
    %8 = vector.broadcast %cst_6 : f32 to vector<8x128xf32>
    %9 = arith.minimumf %5, %8 : vector<8x128xf32>
    %10 = math.exp %9 : vector<8x128xf32>
    %cst_7 = arith.constant 1.000000e+00 : f32
    %11 = vector.broadcast %cst_7 : f32 to vector<8x128xf32>
    %12 = arith.subf %10, %11 : vector<8x128xf32>
    %13 = arith.select %7, %5, %12 : vector<8x128xi1>, vector<8x128xf32>
    %c0_8 = arith.constant 0 : index
    %c0_9 = arith.constant 0 : index
    %14 = vector.load %arg4[%c0_8, %c0_9] : memref<128x128xf32, #tpu.memory_space<vmem>>, vector<128x128xf32>
    %c0_10 = arith.constant 0 : index
    %c0_11 = arith.constant 0 : index
    %15 = vector.load %arg5[%c0_10, %c0_11] : memref<1x128xf32, #tpu.memory_space<vmem>>, vector<1x128xf32>
    %cst_12 = arith.constant dense<0.000000e+00> : vector<8x128xf32>
    %16 = tpu.matmul %13, %14, %cst_12 {dimension_numbers = #tpu.dot_dimension_numbers<[1], [0], [0], [1], [0, 0, 1, 1], [], []>, precision = #tpu.contract_precision<fp32>} : vector<8x128xf32>, vector<128x128xf32>, vector<8x128xf32> -> vector<8x128xf32>
    %17 = vector.broadcast %15 : vector<1x128xf32> to vector<8x128xf32>
    %18 = arith.addf %16, %17 : vector<8x128xf32>
    %cst_13 = arith.constant 0.000000e+00 : f32
    %19 = vector.broadcast %cst_13 : f32 to vector<8x128xf32>
    %20 = arith.cmpf ogt, %18, %19 : vector<8x128xf32>
    %cst_14 = arith.constant 0.000000e+00 : f32
    %21 = vector.broadcast %cst_14 : f32 to vector<8x128xf32>
    %22 = arith.minimumf %18, %21 : vector<8x128xf32>
    %23 = math.exp %22 : vector<8x128xf32>
    %cst_15 = arith.constant 1.000000e+00 : f32
    %24 = vector.broadcast %cst_15 : f32 to vector<8x128xf32>
    %25 = arith.subf %23, %24 : vector<8x128xf32>
    %26 = arith.select %20, %18, %25 : vector<8x128xi1>, vector<8x128xf32>
    %c0_16 = arith.constant 0 : index
    %c0_17 = arith.constant 0 : index
    %27 = vector.load %arg6[%c0_16, %c0_17] : memref<8x128xf32, #tpu.memory_space<vmem>>, vector<8x128xf32>
    tpu.vector_store %arg6[%c0_16, %c0_17], %26 {strides = array<i32>} : memref<8x128xf32, #tpu.memory_space<vmem>>, vector<8x128xf32>,
    return
  }
  func.func @transform_0(%arg0: i32) -> (i32, i32) {
    %c0_i32 = arith.constant 0 : i32
    %c0_i32_0 = arith.constant 0 : i32
    return %arg0, %c0_i32 : i32, i32
  }
  func.func @transform_1(%arg0: i32) -> (i32, i32) {
    %c0_i32 = arith.constant 0 : i32
    %c0_i32_0 = arith.constant 0 : i32
    %c0_i32_1 = arith.constant 0 : i32
    return %c0_i32, %c0_i32_0 : i32, i32
  }
  func.func @transform_2(%arg0: i32) -> (i32, i32) {
    %c0_i32 = arith.constant 0 : i32
    %c0_i32_0 = arith.constant 0 : i32
    %c0_i32_1 = arith.constant 0 : i32
    return %c0_i32, %c0_i32_0 : i32, i32
  }
  func.func @transform_3(%arg0: i32) -> (i32, i32) {
    %c0_i32 = arith.constant 0 : i32
    %c0_i32_0 = arith.constant 0 : i32
    %c0_i32_1 = arith.constant 0 : i32
    return %c0_i32, %c0_i32_0 : i32, i32
  }
  func.func @transform_4(%arg0: i32) -> (i32, i32) {
    %c0_i32 = arith.constant 0 : i32
    %c0_i32_0 = arith.constant 0 : i32
    %c0_i32_1 = arith.constant 0 : i32
    return %c0_i32, %c0_i32_0 : i32, i32
  }
  func.func @transform_5(%arg0: i32) -> (i32, i32) {
    %c0_i32 = arith.constant 0 : i32
    %c0_i32_0 = arith.constant 0 : i32
    return %arg0, %c0_i32 : i32, i32
  }
}

</mosaic_0001>

<bundles_post_ra>
// kernel: tpu_custom_call.1
= control target key start
LH: loop header
LB: loop body
LE: loop exit
PB: predicated region body
PF: predicated region fallthrough
CT: control target
= control target key end

     0   :  { %10 = vsyncpa [#allocation3], 0  ;;  %s2372_s0 = inlined_call_operand.hbm [shape: f32[8,32], index: 0, kind: input, shape index: {}]   ;;  %s2373_s1 = inlined_call_operand.hbm [shape: f32[32,128], index: 1, kind: input, shape index: {}]   ;;  %s2374_s2 = inlined_call_operand.vmem [shape: f32[1,128], index: 2, kind: input, shape index: {}]   ;;  %s2375_s3 = inlined_call_operand.hbm [shape: f32[128,128], index: 3, kind: input, shape index: {}]   ;;  %s2376_s4 = inlined_call_operand.vmem [shape: f32[1,128], index: 4, kind: input, shape index: {}]   ;;  %s2377_s5 = inlined_call_operand.hbm [shape: f32[8,128], index: 5, kind: output, shape index: {}]  }
   0x1   :  { %11 = vsyncpa [#allocation6], 0 }
   0x2   :  { %12 = vsyncpa [#allocation4], 0  ;;  %s1974_s18 = smov [#allocation5]   ;;  %s1880_s22 = scalar_lea.hbm %s2373_s1, 512 }
   0x3   :  { %s28_s19 = sshll.u32 %s1974_s18, 4  ;;  %p1881_p0 = scmp.ne.s32.totalorder %s2373_s1, %s1880_s22  ;;  %s29_s19 = int_to_ptr.vmem [resolvable:$true] %s28_s19 }
   0x4   :  { %p1884_p1 = scmp.lt.u32.totalorder %s1880_s22, %s2373_s1 }
   0x6   :  { %p1886_p2 = pnand %p1884_p1, %p1881_p0 }
   0x8   :  { %1889 = shalt.err (!%p1886_p2)
}
   0x9   :  { %s1890_s27 = scalar_lea.vmem %s29_s19, 512  ;;  %p1895_p4 = scmp.lt.s32.totalorder %s29_s19, %s29_s19 }
   0xa   :  { %p1891_p3 = scmp.ne.s32.totalorder %s29_s19, %s1890_s27  ;;  %p1896_p5 = scmp.lt.s32.totalorder %s1890_s27, %s1890_s27 }
   0xc   :  { %p1897_p6 = por %p1896_p5, %p1895_p4 }
   0xe   :  { %p1898_p7 = pnand %p1897_p6, %p1891_p3 }
  0x10   :  { %1901 = shalt.err (!%p1898_p7)
}
  0x11   :  { %s1975_s28 = smov 128   ;;  %s1976_s29 = smov 8  }
  0x12   :  { %34 = dma.hbm_to_vmem [thread:$0]  %s2373_s1, 512, %s29_s19, [#allocation6], %s1975_s28, %s1975_s28, %s1976_s29  }
  0x13   :  { %s1977_s7 = smov [#allocation2]   ;;  %s1978_s9 = smov [#allocation7]  }
  0x14   :  { %s19_s8 = sshll.u32 %s1977_s7, 4  ;;  %s42_s10 = sshll.u32 %s1978_s9, 4  ;;  %s20_s8 = int_to_ptr.vmem [resolvable:$true] %s19_s8  ;;  %s43_s10 = int_to_ptr.vmem [resolvable:$true] %s42_s10 }
  0x15   :  { %s1902_s13 = scalar_lea.hbm %s2372_s0, 128 }
  0x16   :  { %p1903_p8 = scmp.ne.s32.totalorder %s2372_s0, %s1902_s13  ;;  %p1906_p9 = scmp.lt.u32.totalorder %s1902_s13, %s2372_s0 }
  0x18   :  { %p1908_p10 = pnand %p1906_p9, %p1903_p8 }
  0x1a   :  { %1911 = shalt.err (!%p1908_p10)
}
  0x1b   :  { %s1912_s1 = scalar_lea.vmem %s20_s8, 128  ;;  %p1917_p12 = scmp.lt.s32.totalorder %s20_s8, %s20_s8 }
  0x1c   :  { %p1913_p11 = scmp.ne.s32.totalorder %s20_s8, %s1912_s1  ;;  %p1918_p13 = scmp.lt.s32.totalorder %s1912_s1, %s1912_s1 }
  0x1e   :  { %p1919_p0 = por %p1918_p13, %p1917_p12 }
  0x20   :  { %p1920_p1 = pnand %p1919_p0, %p1913_p11 }
  0x22   :  { %1923 = shalt.err (!%p1920_p1)
}
  0x23   :  { %22 = dma.hbm_to_vmem [thread:$0]  %s2372_s0, 128, %s20_s8, [#allocation3]  }
  0x24   :  { %s1924_s22 = scalar_lea.hbm %s2375_s3, 2048 }
  0x25   :  { %p1925_p2 = scmp.ne.s32.totalorder %s2375_s3, %s1924_s22  ;;  %p1928_p3 = scmp.lt.u32.totalorder %s1924_s22, %s2375_s3 }
  0x27   :  { %p1930_p4 = pnand %p1928_p3, %p1925_p2 }
  0x29   :  { %1933 = shalt.err (!%p1930_p4)
}
  0x2a   :  { %s1934_s27 = scalar_lea.vmem %s43_s10, 2048  ;;  %p1939_p6 = scmp.lt.s32.totalorder %s43_s10, %s43_s10 }
  0x2b   :  { %p1935_p5 = scmp.ne.s32.totalorder %s43_s10, %s1934_s27  ;;  %p1940_p7 = scmp.lt.s32.totalorder %s1934_s27, %s1934_s27 }
  0x2d   :  { %p1941_p8 = por %p1940_p7, %p1939_p6 }
  0x2f   :  { %p1942_p9 = pnand %p1941_p8, %p1935_p5 }
  0x31   :  { %1945 = shalt.err (!%p1942_p9)
}
  0x32   :  { %48 = dma.hbm_to_vmem [thread:$0]  %s2375_s3, 2048, %s43_s10, [#allocation6], %s1975_s28, %s1975_s28, %s1976_s29  }
  0x33   :  { %1968 = dma.done.wait [#allocation3], 128  }
  0x34   :  { %1969 = vsyncadd [#allocation3], 4294967168 }
  0x35   :  { %1970 = dma.done.wait [#allocation6], 2560  }
  0x36   :  { %1971 = vsyncadd [#allocation6], 4294964736  ;;  %v1979_v0 = vmov 0.0|0.0   ;;  %vm1980_vm0 = vmmov 0   ;;  %v1981_v1 = vmov 0.0   ;;  %vm72_vm1 = vcmask 261120  }
  0x37   :  { %1666 = vmatprep.subr.bf16.mxu0 %v1979_v0  ;;  %1398 = vmatprep.mubr.msk.f32.mxu0 %vm1980_vm0, %v1981_v1  ;;  %v61_v2 = vld [vmem:[#allocation5] sm:$0xff]  ;;  %v62_v3 = vld [vmem:[#allocation5 + $0x8] sm:$0xff]  ;;  %v63_v4 = vld [vmem:[#allocation5 + $0x10] sm:$0xff]  ;;  %s1982_s6 = smov [#allocation8]  }
  0x38   :  { %1750 = vmatprep.subr.bf16.mxu1 %v1979_v0  ;;  %1558 = vmatprep.mubr.msk.f32.mxu1 %vm1980_vm0, %v1981_v1  ;;  %v77_v5 = vand.u32 4294901760, %v61_v2  ;;  %v80_v6 = vand.u32 4294901760, %v62_v3  ;;  %v64_v7 = vld [vmem:[#allocation5 + $0x18] sm:$0xff]  ;;  %v83_v8 = vand.u32 4294901760, %v63_v4  ;;  %v2061_v10 = vld [vmem:[#allocation7] sm:$0xff]  ;;  %v2063_v13 = vld [vmem:[#allocation7 + $0x8] sm:$0xff] }
  0x39   :  { %v60_v9 = vld [vmem:[#allocation2] sm:$0xff]  ;;  %v86_v11 = vand.u32 4294901760, %v64_v7  ;;  %v591_v14 = vand.u32 4294901760, %v2061_v10  ;;  %v594_v25 = vand.u32 4294901760, %v2063_v13  ;;  %v2092_v32 = vld [vmem:[#allocation7 + $0x10] sm:$0xff]  ;;  %v571_v56 = vld [vmem:[#allocation7 + $0x20] sm:$0xff] }
  0x3a   :  { %v74_v12 = vsel %vm72_vm1, %v60_v9, 0  ;;  %v2066_v15 = vpack.c.bf16 %v80_v6, %v77_v5  ;;  %v2068_v16 = vsub.f32 %v61_v2, %v77_v5  ;;  %v164_v17 = vsub.f32 %v62_v3, %v80_v6  ;;  %v2094_v33 = vld [vmem:[#allocation7 + $0x18] sm:$0xff]  ;;  %v572_v57 = vld [vmem:[#allocation7 + $0x28] sm:$0xff]  ;;  %v573_v62 = vld [vmem:[#allocation7 + $0x30] sm:$0xff]  ;;  %s1244_s7 = sshll.u32 %s1982_s6, 4  ;;  %s1245_s7 = int_to_ptr.vmem [resolvable:$true] %s1244_s7 }
  0x3b   :  { %v2070_v18 = vsub.f32 %v63_v4, %v83_v8  ;;  %v2072_v19 = vpack.c.bf16 %v86_v11, %v83_v8  ;;  %v2074_v20 = vsub.f32 %v64_v7, %v86_v11  ;;  %v2076_v21 = vand.u32 4294901760, %v74_v12  ;;  %v574_v63 = vld [vmem:[#allocation7 + $0x38] sm:$0xff]  ;;  %v575_v8 = vld [vmem:[#allocation7 + $0x40] sm:$0xff]  ;;  %v576_v9 = vld [vmem:[#allocation7 + $0x48] sm:$0xff]  ;;  %s1946_s8 = scalar_lea.vmem %s1245_s7, 128  ;;  %p1951_p11 = scmp.lt.s32.totalorder %s1245_s7, %s1245_s7 }
  0x3c   :  { %1668 = vmatpush3.bf16.msra.mxu0 %v2066_v15  ;;  %v158_v22 = vand.u32 4294901760, %v2068_v16  ;;  %v165_v23 = vand.u32 4294901760, %v164_v17  ;;  %v2090_v31 = vsub.f32 %v2061_v10, %v591_v14  ;;  %v2101_v38 = vsub.f32 %v2063_v13, %v594_v25  ;;  %p1947_p10 = scmp.ne.s32.totalorder %s1245_s7, %s1946_s8  ;;  %p1952_p12 = scmp.lt.s32.totalorder %s1946_s8, %s1946_s8 }
  0x3d   :  { %v172_v24 = vand.u32 4294901760, %v2070_v18  ;;  %1669 = vmatprep.subr.bf16.mxu0 %v1979_v0  ;;  %v146_v26 = vsub.f32 %v74_v12, %v2076_v21  ;;  %v179_v27 = vand.u32 4294901760, %v2074_v20  ;;  %v597_v40 = vand.u32 4294901760, %v2092_v32 }
  0x3e   :  { %v159_v28 = vsub.f32 %v2068_v16, %v158_v22  ;;  %v166_v29 = vsub.f32 %v164_v17, %v165_v23  ;;  %v600_v41 = vand.u32 4294901760, %v2094_v33  ;;  %v1751_v45 = vpack.c.bf16 %v2101_v38, %v2090_v31  ;;  %p1953_p13 = por %p1952_p12, %p1951_p11 }
  0x3f   :  { %v173_v30 = vsub.f32 %v2070_v18, %v172_v24  ;;  %v147_v34 = vand.u32 4294901760, %v146_v26  ;;  %v180_v35 = vsub.f32 %v2074_v20, %v179_v27  ;;  %v2111_v47 = vsub.f32 %v2092_v32, %v597_v40 }
  0x40   :  { %1671 = vmatpush3.bf16.msra.mxu0 %v2072_v19  ;;  %v160_v36 = vand.u32 4294901760, %v159_v28  ;;  %v167_v37 = vand.u32 4294901760, %v166_v29  ;;  %v2116_v48 = vsub.f32 %v2094_v33, %v600_v41  ;;  %1752 = vmatpush3.bf16.msra.mxu1 %v1751_v45  ;;  %v1679_v51 = vpack.c.bf16 %v164_v17, %v2068_v16  ;;  %v577_v16 = vld [vmem:[#allocation7 + $0x50] sm:$0xff]  ;;  %v578_v17 = vld [vmem:[#allocation7 + $0x58] sm:$0xff]  ;;  %p1954_p0 = pnand %p1953_p13, %p1947_p10 }
  0x41   :  { %v148_v39 = vsub.f32 %v146_v26, %v147_v34  ;;  %1672 = vmatprep.subr.bf16.mxu0 %v1979_v0  ;;  %v174_v43 = vand.u32 4294901760, %v173_v30  ;;  %v181_v44 = vand.u32 4294901760, %v180_v35  ;;  %1753 = vmatprep.subr.bf16.mxu1 %v1979_v0  ;;  %v1682_v52 = vpack.c.bf16 %v2074_v20, %v2070_v18  ;;  %v581_v33 = vld [vmem:[#allocation7 + $0x70] sm:$0xff] }
  0x42   :  { %v1673_v42 = vpack.c.bf16 %v167_v37, %v160_v36  ;;  %v1754_v49 = vpack.c.bf16 %v2116_v48, %v2111_v47  ;;  %v1691_v53 = vpack.c.bf16 %v165_v23, %v158_v22  ;;  %v1694_v54 = vpack.c.bf16 %v179_v27, %v172_v24  ;;  %v579_v24 = vld [vmem:[#allocation7 + $0x60] sm:$0xff] }
  0x43   :  { %v149_v46 = vand.u32 4294901760, %v148_v39  ;;  %v1676_v50 = vpack.c.bf16 %v181_v44, %v174_v43  ;;  %v2154_v55 = vpack.c.bf16 %v594_v25, %v591_v14  ;;  %v603_v58 = vand.u32 4294901760, %v571_v56  ;;  %v580_v25 = vld [vmem:[#allocation7 + $0x68] sm:$0xff] }
  0x44   :  { %1755 = vmatpush3.bf16.msra.mxu1 %v1754_v49  ;;  %v606_v59 = vand.u32 4294901760, %v572_v57  ;;  %v609_v3 = vand.u32 4294901760, %v573_v62  ;;  %v612_v4 = vand.u32 4294901760, %v574_v63  ;;  %v2172_v5 = vpack.c.bf16 %v600_v41, %v597_v40 }
  0x45   :  { %1399 = vmatmul.mubr.f32.vlgmr.msra.gmra.mrb[0].mxu0 %v149_v46  ;;  %1756 = vmatprep.subr.bf16.mxu1 %v1979_v0  ;;  %v2162_v60 = vsub.f32 %v571_v56, %v603_v58  ;;  %v615_v11 = vand.u32 4294901760, %v575_v8  ;;  %v618_v12 = vand.u32 4294901760, %v576_v9  ;;  %v624_v20 = vand.u32 4294901760, %v578_v17 }
  0x46   :  { %1674 = vmatpush3.bf16.msra.mxu0 %v1673_v42  ;;  %1409 = vmatprep.mubr.msk.f32.mxu0 %vm1980_vm0, %v1981_v1  ;;  %v2164_v61 = vsub.f32 %v572_v57, %v606_v59  ;;  %v2174_v6 = vsub.f32 %v573_v62, %v609_v3  ;;  %v2176_v7 = vsub.f32 %v574_v63, %v612_v4  ;;  %v627_v27 = vand.u32 4294901760, %v579_v24 }
  0x47   :  { %1675 = vmatprep.subr.bf16.mxu0 %v1979_v0  ;;  %v2183_v13 = vpack.c.bf16 %v606_v59, %v603_v58  ;;  %v2185_v14 = vsub.f32 %v575_v8, %v615_v11  ;;  %v2198_v23 = vsub.f32 %v578_v17, %v624_v20  ;;  %v630_v28 = vand.u32 4294901760, %v580_v25 }
  0x48   :  { %v1757_v2 = vpack.c.bf16 %v2164_v61, %v2162_v60  ;;  %v1760_v10 = vpack.c.bf16 %v2176_v7, %v2174_v6  ;;  %v2205_v29 = vpack.c.bf16 %v618_v12, %v615_v11  ;;  %v2207_v30 = vsub.f32 %v579_v24, %v627_v27 }
  0x49   :  { %v2209_v32 = vsub.f32 %v580_v25, %v630_v28  ;;  %v633_v36 = vand.u32 4294901760, %v581_v33  ;;  %v2220_v43 = vpack.c.bf16 %v630_v28, %v627_v27  ;;  %v712_v45 = vand.u32 4294901760, %v2162_v60 }
  0x4a   :  { %1677 = vmatpush3.bf16.msra.mxu0 %v1676_v50  ;;  %1758 = vmatpush3.bf16.msra.mxu1 %v1757_v2  ;;  %v719_v46 = vand.u32 4294901760, %v2164_v61  ;;  %v740_v63 = vand.u32 4294901760, %v2185_v14  ;;  %v768_v17 = vand.u32 4294901760, %v2207_v30 }
  0x4b   :  { %1678 = vmatprep.subr.bf16.mxu0 %v1979_v0  ;;  %1759 = vmatprep.subr.bf16.mxu1 %v1979_v0  ;;  %v1769_v35 = vpack.c.bf16 %v2209_v32, %v2207_v30  ;;  %v781_v40 = vsub.f32 %v581_v33, %v633_v36  ;;  %v713_v49 = vsub.f32 %v2162_v60, %v712_v45 }
  0x4c   :  { %v720_v50 = vsub.f32 %v2164_v61, %v719_v46  ;;  %v741_v61 = vsub.f32 %v2185_v14, %v740_v63 }
  0x4d   :  { %1410 = vmatmul.mubr.f32.vlgmr.msra.gmra.mrb[0].mxu0 %v2076_v21  ;;  %v782_v25 = vand.u32 4294901760, %v781_v40 }
  0x4e   :  { %1680 = vmatpush3.bf16.msra.mxu0 %v1679_v51  ;;  %1420 = vmatprep.mubr.msk.f32.mxu0 %vm1980_vm0, %v1981_v1  ;;  %v714_v51 = vand.u32 4294901760, %v713_v49 }
  0x4f   :  { %1681 = vmatprep.subr.bf16.mxu0 %v1979_v0  ;;  %1761 = vmatpush3.bf16.msra.mxu1 %v1760_v10 }
  0x50   :  { %1762 = vmatprep.subr.bf16.mxu1 %v1979_v0 }
  0x52   :  { %1683 = vmatpush3.bf16.msra.mxu0 %v1682_v52  ;;  %v721_v52 = vand.u32 4294901760, %v720_v50 }
  0x53   :  { %1684 = vmatprep.subr.bf16.mxu0 %v1979_v0 }
  0x54   :  { %v2236_v56 = vpack.c.bf16 %v721_v52, %v714_v51  ;;  %v691_v52 = vand.u32 4294901760, %v2101_v38 }
  0x55   :  { %1421 = vmatmul.mubr.f32.vlgmr.msra.gmra.mrb[0].mxu0 %v146_v26 }
  0x56   :  { %1686 = vmatpush3.bf16.msra.mxu0 %v2066_v15  ;;  %1431 = vmatprep.mubr.msk.f32.mxu0 %vm1980_vm0, %v1981_v1 }
  0x57   :  { %1687 = vmatprep.subr.bf16.mxu0 %v1979_v0 }
  0x5a   :  { %1689 = vmatpush3.bf16.msra.mxu0 %v2072_v19 }
  0x5b   :  { %1690 = vmatprep.subr.bf16.mxu0 %v1979_v0 }
  0x5d   :  { %1432 = vmatmul.mubr.f32.vlgmr.msra.gmra.mrb[0].mxu0 %v147_v34  ;;  %v582_v34 = vld [vmem:[#allocation7 + $0x78] sm:$0xff] }
  0x5e   :  { %1692 = vmatpush3.bf16.msra.mxu0 %v1691_v53  ;;  %1442 = vmatprep.mubr.msk.f32.mxu0 %vm1980_vm0, %v1981_v1  ;;  %v636_v37 = vand.u32 4294901760, %v582_v34  ;;  %v726_v53 = vand.u32 4294901760, %v2174_v6 }
  0x5f   :  { %1693 = vmatprep.subr.bf16.mxu0 %v1979_v0 }
  0x60   :  { %v788_v41 = vsub.f32 %v582_v34, %v636_v37  ;;  %v2226_v44 = vpack.c.bf16 %v636_v37, %v633_v36  ;;  %v727_v57 = vsub.f32 %v2174_v6, %v726_v53  ;;  %v761_v6 = vand.u32 4294901760, %v2198_v23 }
  0x62   :  { %1695 = vmatpush3.bf16.msra.mxu0 %v1694_v54  ;;  %v1772_v42 = vpack.c.bf16 %v788_v41, %v781_v40  ;;  %v733_v54 = vand.u32 4294901760, %v2176_v7  ;;  %v728_v59 = vand.u32 4294901760, %v727_v57  ;;  %v762_v11 = vsub.f32 %v2198_v23, %v761_v6 }
  0x63   :  { %1696 = vmatprep.subr.bf16.mxu0 %v1979_v0 }
  0x64   :  { %v734_v58 = vsub.f32 %v2176_v7, %v733_v54  ;;  %v2264_v36 = vpack.c.bf16 %v733_v54, %v726_v53 }
  0x65   :  { %1443 = vmatmul.mubr.f32.vlgmr.msra.gmra.mrb[0].mxu0 %v2076_v21 }
  0x66   :  { %1698 = vmatpush3.bf16.msra.mxu0 %v2066_v15  ;;  %1453 = vmatprep.mubr.msk.f32.mxu0 %vm1980_vm0, %v1981_v1  ;;  %v2187_v15 = vsub.f32 %v576_v9, %v618_v12  ;;  %v735_v62 = vand.u32 4294901760, %v734_v58 }
  0x67   :  { %1699 = vmatprep.subr.bf16.mxu0 %v1979_v0 }
  0x68   :  { %v1763_v18 = vpack.c.bf16 %v2187_v15, %v2185_v14  ;;  %v747_v60 = vand.u32 4294901760, %v2187_v15  ;;  %v2242_v2 = vpack.c.bf16 %v735_v62, %v728_v59  ;;  %v775_v14 = vand.u32 4294901760, %v2209_v32 }
  0x69   :  { %v692_v59 = vsub.f32 %v2101_v38, %v691_v52  ;;  %v698_v62 = vand.u32 4294901760, %v2111_v47 }
  0x6a   :  { %1701 = vmatpush3.bf16.msra.mxu0 %v2072_v19  ;;  %v621_v19 = vand.u32 4294901760, %v577_v16  ;;  %1764 = vmatpush3.bf16.msra.mxu1 %v1763_v18  ;;  %v2266_v37 = vpack.c.bf16 %v747_v60, %v740_v63  ;;  %v705_v63 = vand.u32 4294901760, %v2116_v48 }
  0x6b   :  { %1702 = vmatprep.subr.bf16.mxu0 %v1979_v0  ;;  %1765 = vmatprep.subr.bf16.mxu1 %v1979_v0 }
  0x6c   :  { %v2196_v22 = vsub.f32 %v577_v16, %v621_v19  ;;  %v2216_v39 = vpack.c.bf16 %v624_v20, %v621_v19  ;;  %v763_v16 = vand.u32 4294901760, %v762_v11  ;;  %v776_v19 = vsub.f32 %v2209_v32, %v775_v14 }
  0x6d   :  { %1454 = vmatmul.mubr.f32.vlgmr.msra.gmra.mrb[0].mxu0 %v2076_v21  ;;  %v2194_v21 = vpack.c.bf16 %v612_v4, %v609_v3  ;;  %v748_v3 = vsub.f32 %v2187_v15, %v747_v60  ;;  %v742_v4 = vand.u32 4294901760, %v741_v61  ;;  %v769_v15 = vsub.f32 %v2207_v30, %v768_v17 }
  0x6e   :  { %1704 = vmatpush3.bf16.msra.mxu0 %v2154_v55  ;;  %1488 = vmatprep.mubr.msk.f32.mxu0 %vm1980_vm0, %v1981_v1  ;;  %v1766_v26 = vpack.c.bf16 %v2198_v23, %v2196_v22  ;;  %v754_v9 = vand.u32 4294901760, %v2196_v22  ;;  %v777_v24 = vand.u32 4294901760, %v776_v19  ;;  %v2270_v32 = vpack.c.bf16 %v775_v14, %v768_v17 }
  0x6f   :  { %1705 = vmatprep.subr.bf16.mxu0 %v1979_v0  ;;  %v749_v8 = vand.u32 4294901760, %v748_v3  ;;  %v770_v20 = vand.u32 4294901760, %v769_v15 }
  0x70   :  { %1767 = vmatpush3.bf16.msra.mxu1 %v1766_v26  ;;  %v755_v7 = vsub.f32 %v2196_v22, %v754_v9  ;;  %v789_v26 = vand.u32 4294901760, %v788_v41  ;;  %v783_v22 = vsub.f32 %v781_v40, %v782_v25  ;;  %v2268_v30 = vpack.c.bf16 %v761_v6, %v754_v9  ;;  %v1254_v40 = vld [vmem:[%s2374_s2] ss:$0 sm:$0xff] }
  0x71   :  { %1768 = vmatprep.subr.bf16.mxu1 %v1979_v0  ;;  %v2248_v10 = vpack.c.bf16 %v749_v8, %v742_v4  ;;  %v2258_v27 = vpack.c.bf16 %v777_v24, %v770_v20  ;;  %v693_v4 = vand.u32 4294901760, %v692_v59  ;;  %v699_v8 = vsub.f32 %v2111_v47, %v698_v62 }
  0x72   :  { %1707 = vmatpush3.bf16.msra.mxu0 %v2172_v5  ;;  %v756_v12 = vand.u32 4294901760, %v755_v7  ;;  %v790_v23 = vsub.f32 %v788_v41, %v789_v26  ;;  %v784_v28 = vand.u32 4294901760, %v783_v22  ;;  %v706_v9 = vsub.f32 %v2116_v48, %v705_v63 }
  0x73   :  { %1708 = vmatprep.subr.bf16.mxu0 %v1979_v0  ;;  %v700_v7 = vand.u32 4294901760, %v699_v8 }
  0x74   :  { %1770 = vmatpush3.bf16.msra.mxu1 %v1769_v35  ;;  %v2254_v18 = vpack.c.bf16 %v763_v16, %v756_v12  ;;  %v791_v33 = vand.u32 4294901760, %v790_v23  ;;  %v2262_v35 = vpack.c.bf16 %v719_v46, %v712_v45  ;;  %v684_v46 = vand.u32 4294901760, %v2090_v31 }
  0x75   :  { %1771 = vmatprep.subr.bf16.mxu1 %v1979_v0  ;;  %v707_v11 = vand.u32 4294901760, %v706_v9 }
  0x76   :  { %1710 = vmatpush3.bf16.msra.mxu0 %v2183_v13  ;;  %v2260_v34 = vpack.c.bf16 %v791_v33, %v784_v28  ;;  %v685_v57 = vsub.f32 %v2090_v31, %v684_v46  ;;  %v1799_v48 = vpack.c.bf16 %v691_v52, %v684_v46 }
  0x77   :  { %1711 = vmatprep.subr.bf16.mxu0 %v1979_v0  ;;  %v1730_v47 = vpack.c.bf16 %v707_v11, %v700_v7 }
  0x78   :  { %1773 = vmatpush3.bf16.msra.mxu1 %v1772_v42  ;;  %v2272_v42 = vpack.c.bf16 %v789_v26, %v782_v25  ;;  %v686_v3 = vand.u32 4294901760, %v685_v57 }
  0x79   :  { %1774 = vmatprep.subr.bf16.mxu1 %v1979_v0 }
  0x7a   :  { %1713 = vmatpush3.bf16.msra.mxu0 %v2194_v21  ;;  %v1727_v38 = vpack.c.bf16 %v693_v4, %v686_v3 }
  0x7b   :  { %1714 = vmatprep.subr.bf16.mxu0 %v1979_v0 }
  0x7e   :  { %1716 = vmatpush3.bf16.msra.mxu0 %v2205_v29 }
  0x7f   :  { %1717 = vmatprep.subr.bf16.mxu0 %v1979_v0 }
  0x82   :  { %1719 = vmatpush3.bf16.msra.mxu0 %v2216_v39 }
  0x83   :  { %1720 = vmatprep.subr.bf16.mxu0 %v1979_v0 }
  0x86   :  { %1722 = vmatpush3.bf16.msra.mxu0 %v2220_v43 }
  0x87   :  { %1723 = vmatprep.subr.bf16.mxu0 %v1979_v0 }
  0x8a   :  { %1725 = vmatpush3.bf16.msra.mxu0 %v2226_v44 }
  0x8b   :  { %1726 = vmatprep.subr.bf16.mxu0 %v1979_v0 }
 0x140   :  { %v557_v41 = vpop.f32.mrb[0].mxu0 }
 0x141   :  { %v1846_v49 = vadd.f32 %v1254_v40, %v557_v41  ;;  %v1455_v50 = vpop.f32.mrb[1].mxu0 }
 0x143   :  { %v562_v51 = vmin.f32 %v1846_v49, 0.0  ;;  %vm561_vm2 = vcmp.gt.f32.partialorder %v1846_v49, 0.0 }
 0x145   :  { %v563_v45 = vmul.f32 1.442695, %v562_v51 }
 0x147   :  { %1876 = vpow2.f32 %v563_v45 }
 0x151   :  { %v1877_v53 = vpop.eup %1876 }
 0x152   :  { %v1255_v54 = vadd.f32 -1.0, %v1877_v53 }
 0x154   :  { %v566_v58 = vsel %vm561_vm2, %v1846_v49, %v1255_v54 }
 0x155   :  { %v2283_v60 = vand.u32 4294901760, %v566_v58 }
 0x157   :  { %v672_v61 = vsub.f32 %v566_v58, %v2283_v60 }
 0x159   :  { %v673_v6 = vand.u32 4294901760, %v672_v61  ;;  %1559 = vmatmul.mubr.f32.vlgmr.msra.gmra.mrb[0].mxu1 %v672_v61 }
 0x15a   :  { %1776 = vmatpush3.bf16.msra.mxu1 %v2154_v55  ;;  %1593 = vmatprep.mubr.msk.f32.mxu1 %vm1980_vm0, %v1981_v1 }
 0x15b   :  { %1777 = vmatprep.subr.bf16.mxu1 %v1979_v0  ;;  %v674_v31 = vsub.f32 %v672_v61, %v673_v6 }
 0x15d   :  { %v675_v12 = vand.u32 4294901760, %v674_v31 }
 0x15e   :  { %1779 = vmatpush3.bf16.msra.mxu1 %v2172_v5 }
 0x15f   :  { %1489 = vmatmul.mubr.f32.vlgmr.msra.gmra.mrb[2].mxu0 %v675_v12  ;;  %1780 = vmatprep.subr.bf16.mxu1 %v1979_v0 }
 0x160   :  { %1728 = vmatpush3.bf16.msra.mxu0 %v1727_v38  ;;  %1523 = vmatprep.mubr.msk.f32.mxu0 %vm1980_vm0, %v1981_v1 }
 0x161   :  { %1729 = vmatprep.subr.bf16.mxu0 %v1979_v0 }
 0x162   :  { %1782 = vmatpush3.bf16.msra.mxu1 %v2183_v13 }
 0x163   :  { %1783 = vmatprep.subr.bf16.mxu1 %v1979_v0 }
 0x164   :  { %1731 = vmatpush3.bf16.msra.mxu0 %v1730_v47 }
 0x165   :  { %1732 = vmatprep.subr.bf16.mxu0 %v1979_v0 }
 0x166   :  { %1785 = vmatpush3.bf16.msra.mxu1 %v2194_v21 }
 0x167   :  { %1786 = vmatprep.subr.bf16.mxu1 %v1979_v0 }
 0x168   :  { %1734 = vmatpush3.bf16.msra.mxu0 %v2236_v56  ;;  %v1802_v56 = vpack.c.bf16 %v705_v63, %v698_v62 }
 0x169   :  { %1735 = vmatprep.subr.bf16.mxu0 %v1979_v0 }
 0x16a   :  { %1788 = vmatpush3.bf16.msra.mxu1 %v2205_v29 }
 0x16b   :  { %1789 = vmatprep.subr.bf16.mxu1 %v1979_v0 }
 0x16c   :  { %1737 = vmatpush3.bf16.msra.mxu0 %v2242_v2 }
 0x16d   :  { %1738 = vmatprep.subr.bf16.mxu0 %v1979_v0 }
 0x16e   :  { %1791 = vmatpush3.bf16.msra.mxu1 %v2216_v39 }
 0x16f   :  { %1792 = vmatprep.subr.bf16.mxu1 %v1979_v0 }
 0x170   :  { %1740 = vmatpush3.bf16.msra.mxu0 %v2248_v10 }
 0x171   :  { %1741 = vmatprep.subr.bf16.mxu0 %v1979_v0 }
 0x172   :  { %1794 = vmatpush3.bf16.msra.mxu1 %v2220_v43 }
 0x173   :  { %1795 = vmatprep.subr.bf16.mxu1 %v1979_v0 }
 0x174   :  { %1743 = vmatpush3.bf16.msra.mxu0 %v2254_v18 }
 0x175   :  { %1744 = vmatprep.subr.bf16.mxu0 %v1979_v0 }
 0x176   :  { %1797 = vmatpush3.bf16.msra.mxu1 %v2226_v44 }
 0x177   :  { %1798 = vmatprep.subr.bf16.mxu1 %v1979_v0 }
 0x178   :  { %1746 = vmatpush3.bf16.msra.mxu0 %v2258_v27 }
 0x179   :  { %1594 = vmatmul.mubr.f32.vlgmr.msra.gmra.mrb[0].mxu1 %v673_v6  ;;  %1747 = vmatprep.subr.bf16.mxu0 %v1979_v0 }
 0x17a   :  { %1800 = vmatpush3.bf16.msra.mxu1 %v1799_v48  ;;  %1628 = vmatprep.mubr.msk.f32.mxu1 %vm1980_vm0, %v1981_v1 }
 0x17b   :  { %1801 = vmatprep.subr.bf16.mxu1 %v1979_v0 }
 0x17c   :  { %1749 = vmatpush3.bf16.msra.mxu0 %v2260_v34 }
 0x17e   :  { %1803 = vmatpush3.bf16.msra.mxu1 %v1802_v56 }
 0x17f   :  { %1524 = vmatmul.mubr.f32.vlgmr.msra.gmra.mrb[2].mxu0 %v2283_v60  ;;  %1804 = vmatprep.subr.bf16.mxu1 %v1979_v0 }
 0x182   :  { %1806 = vmatpush3.bf16.msra.mxu1 %v2262_v35 }
 0x183   :  { %1807 = vmatprep.subr.bf16.mxu1 %v1979_v0 }
 0x186   :  { %1809 = vmatpush3.bf16.msra.mxu1 %v2264_v36 }
 0x187   :  { %1810 = vmatprep.subr.bf16.mxu1 %v1979_v0 }
 0x18a   :  { %1812 = vmatpush3.bf16.msra.mxu1 %v2266_v37 }
 0x18b   :  { %1813 = vmatprep.subr.bf16.mxu1 %v1979_v0 }
 0x18e   :  { %1815 = vmatpush3.bf16.msra.mxu1 %v2268_v30 }
 0x18f   :  { %1816 = vmatprep.subr.bf16.mxu1 %v1979_v0 }
 0x192   :  { %1818 = vmatpush3.bf16.msra.mxu1 %v2270_v32 }
 0x193   :  { %1819 = vmatprep.subr.bf16.mxu1 %v1979_v0 }
 0x196   :  { %1821 = vmatpush3.bf16.msra.mxu1 %v2272_v42 }
 0x197   :  { %1822 = vmatprep.subr.bf16.mxu1 %v1979_v0 }
 0x199   :  { %1629 = vmatmul.mubr.f32.vlgmr.msra.gmra.mrb[0].mxu1 %v2283_v60 }
 0x19a   :  { %1824 = vmatpush3.bf16.msra.mxu1 %v2154_v55  ;;  %1663 = vmatprep.mubr.msk.f32.mxu1 %vm1980_vm0, %v1981_v1 }
 0x19b   :  { %1825 = vmatprep.subr.bf16.mxu1 %v1979_v0 }
 0x19e   :  { %1827 = vmatpush3.bf16.msra.mxu1 %v2172_v5  ;;  %v1256_v5 = vld [vmem:[%s2376_s4] ss:$0 sm:$0xff] }
 0x19f   :  { %1828 = vmatprep.subr.bf16.mxu1 %v1979_v0 }
 0x1a2   :  { %1830 = vmatpush3.bf16.msra.mxu1 %v2183_v13 }
 0x1a3   :  { %1831 = vmatprep.subr.bf16.mxu1 %v1979_v0 }
 0x1a6   :  { %1833 = vmatpush3.bf16.msra.mxu1 %v2194_v21 }
 0x1a7   :  { %1834 = vmatprep.subr.bf16.mxu1 %v1979_v0 }
 0x1aa   :  { %1836 = vmatpush3.bf16.msra.mxu1 %v2205_v29 }
 0x1ab   :  { %1837 = vmatprep.subr.bf16.mxu1 %v1979_v0 }
 0x1ae   :  { %1839 = vmatpush3.bf16.msra.mxu1 %v2216_v39 }
 0x1af   :  { %1840 = vmatprep.subr.bf16.mxu1 %v1979_v0 }
 0x1b2   :  { %1842 = vmatpush3.bf16.msra.mxu1 %v2220_v43 }
 0x1b3   :  { %1843 = vmatprep.subr.bf16.mxu1 %v1979_v0 }
 0x1b6   :  { %1845 = vmatpush3.bf16.msra.mxu1 %v2226_v44 }
 0x1b9   :  { %1664 = vmatmul.mubr.f32.vlgmr.msra.gmra.mrb[0].mxu1 %v2283_v60 }
 0x252   :  { %v828_v1 = vpop.f32.mrb[2].mxu0 }
 0x253   :  { %v1525_v55 = vpop.f32.mrb[3].mxu0  ;;  %v1847_v13 = vadd.f32 %v1256_v5, %v828_v1 }
 0x28c   :  { %v1227_v21 = vpop.f32.mrb[0].mxu1 }
 0x28d   :  { %v1848_v29 = vadd.f32 %v1847_v13, %v1227_v21  ;;  %v1665_v39 = vpop.f32.mrb[1].mxu1 }
 0x28f   :  { %v1232_v2 = vmin.f32 %v1848_v29, 0.0  ;;  %vm1231_vm3 = vcmp.gt.f32.partialorder %v1848_v29, 0.0 }
 0x291   :  { %v1233_v10 = vmul.f32 1.442695, %v1232_v2 }
 0x293   :  { %1878 = vpow2.f32 %v1233_v10 }
 0x29d   :  { %v1879_v0 = vpop.eup %1878 }
 0x29e   :  { %v1257_v43 = vadd.f32 -1.0, %v1879_v0 }
 0x2a0   :  { %v1236_v44 = vsel %vm1231_vm3, %v1848_v29, %v1257_v43 }
 0x2a1   :  { %1237 = vst [vmem:[#allocation8] sm:$0xff] %v1236_v44 }
 0x2a2   :  { %1957 = shalt.err (!%p1954_p0)
}
 0x2a3   :  { %s1958_s10 = scalar_lea.hbm %s2377_s5, 128 }
 0x2a4   :  { %p1959_p1 = scmp.ne.s32.totalorder %s2377_s5, %s1958_s10  ;;  %p1962_p2 = scmp.lt.u32.totalorder %s1958_s10, %s2377_s5 }
 0x2a6   :  { %p1964_p3 = pnand %p1962_p2, %p1959_p1 }
 0x2a8   :  { %1967 = shalt.err (!%p1964_p3)
}
 0x2a9   :  { %1247 = dma.vmem_to_hbm [thread:$0]  %s1245_s7, 128, %s2377_s5, [#allocation4]  }
 0x2aa   :  { %1972 = dma.done.wait [#allocation4], 128  }
 0x2ab   :  { %1973 = vsyncadd [#allocation4], 4294967168 }
 0x2ac   :  { %1251 = vsyncpa [#allocation3], 1 }
 0x2ad   :  { %1252 = vsyncpa [#allocation6], 1 }
 0x2ae   :  { %1253 = vsyncpa [#allocation4], 1 }

// kernel: tpu_custom_call.1
= control target key start
LH: loop header
LB: loop body
LE: loop exit
PB: predicated region body
PF: predicated region fallthrough
CT: control target
= control target key end

     0   :  { %10 = vsyncpa [#allocation3], 0  ;;  %s2372_s0 = inlined_call_operand.hbm [shape: f32[8,32], index: 0, kind: input, shape index: {}]   ;;  %s2373_s1 = inlined_call_operand.hbm [shape: f32[32,128], index: 1, kind: input, shape index: {}]   ;;  %s2374_s2 = inlined_call_operand.vmem [shape: f32[1,128], index: 2, kind: input, shape index: {}]   ;;  %s2375_s3 = inlined_call_operand.hbm [shape: f32[128,128], index: 3, kind: input, shape index: {}]   ;;  %s2376_s4 = inlined_call_operand.vmem [shape: f32[1,128], index: 4, kind: input, shape index: {}]   ;;  %s2377_s5 = inlined_call_operand.hbm [shape: f32[8,128], index: 5, kind: output, shape index: {}]  }
   0x1   :  { %11 = vsyncpa [#allocation6], 0 }
   0x2   :  { %12 = vsyncpa [#allocation4], 0  ;;  %s1974_s18 = smov [#allocation5]   ;;  %s1880_s22 = scalar_lea.hbm %s2373_s1, 512 }
   0x3   :  { %s28_s19 = sshll.u32 %s1974_s18, 4  ;;  %p1881_p0 = scmp.ne.s32.totalorder %s2373_s1, %s1880_s22  ;;  %s29_s19 = int_to_ptr.vmem [resolvable:$true] %s28_s19 }
   0x4   :  { %p1884_p1 = scmp.lt.u32.totalorder %s1880_s22, %s2373_s1 }
   0x6   :  { %p1886_p2 = pnand %p1884_p1, %p1881_p0 }
   0x8   :  { %1889 = shalt.err (!%p1886_p2)
}
   0x9   :  { %s1890_s27 = scalar_lea.vmem %s29_s19, 512  ;;  %p1895_p4 = scmp.lt.s32.totalorder %s29_s19, %s29_s19 }
   0xa   :  { %p1891_p3 = scmp.ne.s32.totalorder %s29_s19, %s1890_s27  ;;  %p1896_p5 = scmp.lt.s32.totalorder %s1890_s27, %s1890_s27 }
   0xc   :  { %p1897_p6 = por %p1896_p5, %p1895_p4 }
   0xe   :  { %p1898_p7 = pnand %p1897_p6, %p1891_p3 }
  0x10   :  { %1901 = shalt.err (!%p1898_p7)
}
  0x11   :  { %s1975_s28 = smov 128   ;;  %s1976_s29 = smov 8  }
  0x12   :  { %34 = dma.hbm_to_vmem [thread:$0]  %s2373_s1, 512, %s29_s19, [#allocation6], %s1975_s28, %s1975_s28, %s1976_s29  }
  0x13   :  { %s1977_s7 = smov [#allocation2]   ;;  %s1978_s9 = smov [#allocation7]  }
  0x14   :  { %s19_s8 = sshll.u32 %s1977_s7, 4  ;;  %s42_s10 = sshll.u32 %s1978_s9, 4  ;;  %s20_s8 = int_to_ptr.vmem [resolvable:$true] %s19_s8  ;;  %s43_s10 = int_to_ptr.vmem [resolvable:$true] %s42_s10 }
  0x15   :  { %s1902_s13 = scalar_lea.hbm %s2372_s0, 128 }
  0x16   :  { %p1903_p8 = scmp.ne.s32.totalorder %s2372_s0, %s1902_s13  ;;  %p1906_p9 = scmp.lt.u32.totalorder %s1902_s13, %s2372_s0 }
  0x18   :  { %p1908_p10 = pnand %p1906_p9, %p1903_p8 }
  0x1a   :  { %1911 = shalt.err (!%p1908_p10)
}
  0x1b   :  { %s1912_s1 = scalar_lea.vmem %s20_s8, 128  ;;  %p1917_p12 = scmp.lt.s32.totalorder %s20_s8, %s20_s8 }
  0x1c   :  { %p1913_p11 = scmp.ne.s32.totalorder %s20_s8, %s1912_s1  ;;  %p1918_p13 = scmp.lt.s32.totalorder %s1912_s1, %s1912_s1 }
  0x1e   :  { %p1919_p0 = por %p1918_p13, %p1917_p12 }
  0x20   :  { %p1920_p1 = pnand %p1919_p0, %p1913_p11 }
  0x22   :  { %1923 = shalt.err (!%p1920_p1)
}
  0x23   :  { %22 = dma.hbm_to_vmem [thread:$0]  %s2372_s0, 128, %s20_s8, [#allocation3]  }
  0x24   :  { %s1924_s22 = scalar_lea.hbm %s2375_s3, 2048 }
  0x25   :  { %p1925_p2 = scmp.ne.s32.totalorder %s2375_s3, %s1924_s22  ;;  %p1928_p3 = scmp.lt.u32.totalorder %s1924_s22, %s2375_s3 }
  0x27   :  { %p1930_p4 = pnand %p1928_p3, %p1925_p2 }
  0x29   :  { %1933 = shalt.err (!%p1930_p4)
}
  0x2a   :  { %s1934_s27 = scalar_lea.vmem %s43_s10, 2048  ;;  %p1939_p6 = scmp.lt.s32.totalorder %s43_s10, %s43_s10 }
  0x2b   :  { %p1935_p5 = scmp.ne.s32.totalorder %s43_s10, %s1934_s27  ;;  %p1940_p7 = scmp.lt.s32.totalorder %s1934_s27, %s1934_s27 }
  0x2d   :  { %p1941_p8 = por %p1940_p7, %p1939_p6 }
  0x2f   :  { %p1942_p9 = pnand %p1941_p8, %p1935_p5 }
  0x31   :  { %1945 = shalt.err (!%p1942_p9)
}
  0x32   :  { %48 = dma.hbm_to_vmem [thread:$0]  %s2375_s3, 2048, %s43_s10, [#allocation6], %s1975_s28, %s1975_s28, %s1976_s29  }
  0x33   :  { %1968 = dma.done.wait [#allocation3], 128  }
  0x34   :  { %1969 = vsyncadd [#allocation3], 4294967168 }
  0x35   :  { %1970 = dma.done.wait [#allocation6], 2560  }
  0x36   :  { %1971 = vsyncadd [#allocation6], 4294964736  ;;  %v1979_v0 = vmov 0.0|0.0   ;;  %vm1980_vm0 = vmmov 0   ;;  %v1981_v1 = vmov 0.0   ;;  %vm72_vm1 = vcmask 261120  }
  0x37   :  { %1666 = vmatprep.subr.bf16.mxu0 %v1979_v0  ;;  %1398 = vmatprep.mubr.msk.f32.mxu0 %vm1980_vm0, %v1981_v1  ;;  %v61_v2 = vld [vmem:[#allocation5] sm:$0xff]  ;;  %v62_v3 = vld [vmem:[#allocation5 + $0x8] sm:$0xff]  ;;  %v63_v4 = vld [vmem:[#allocation5 + $0x10] sm:$0xff]  ;;  %s1982_s6 = smov [#allocation8]  }
  0x38   :  { %1750 = vmatprep.subr.bf16.mxu1 %v1979_v0  ;;  %1558 = vmatprep.mubr.msk.f32.mxu1 %vm1980_vm0, %v1981_v1  ;;  %v77_v5 = vand.u32 4294901760, %v61_v2  ;;  %v80_v6 = vand.u32 4294901760, %v62_v3  ;;  %v64_v7 = vld [vmem:[#allocation5 + $0x18] sm:$0xff]  ;;  %v83_v8 = vand.u32 4294901760, %v63_v4  ;;  %v2061_v10 = vld [vmem:[#allocation7] sm:$0xff]  ;;  %v2063_v13 = vld [vmem:[#allocation7 + $0x8] sm:$0xff] }
  0x39   :  { %v60_v9 = vld [vmem:[#allocation2] sm:$0xff]  ;;  %v86_v11 = vand.u32 4294901760, %v64_v7  ;;  %v591_v14 = vand.u32 4294901760, %v2061_v10  ;;  %v594_v25 = vand.u32 4294901760, %v2063_v13  ;;  %v2092_v32 = vld [vmem:[#allocation7 + $0x10] sm:$0xff]  ;;  %v571_v56 = vld [vmem:[#allocation7 + $0x20] sm:$0xff] }
  0x3a   :  { %v74_v12 = vsel %vm72_vm1, %v60_v9, 0  ;;  %v2066_v15 = vpack.c.bf16 %v80_v6, %v77_v5  ;;  %v2068_v16 = vsub.f32 %v61_v2, %v77_v5  ;;  %v164_v17 = vsub.f32 %v62_v3, %v80_v6  ;;  %v2094_v33 = vld [vmem:[#allocation7 + $0x18] sm:$0xff]  ;;  %v572_v57 = vld [vmem:[#allocation7 + $0x28] sm:$0xff]  ;;  %v573_v62 = vld [vmem:[#allocation7 + $0x30] sm:$0xff]  ;;  %s1244_s7 = sshll.u32 %s1982_s6, 4  ;;  %s1245_s7 = int_to_ptr.vmem [resolvable:$true] %s1244_s7 }
  0x3b   :  { %v2070_v18 = vsub.f32 %v63_v4, %v83_v8  ;;  %v2072_v19 = vpack.c.bf16 %v86_v11, %v83_v8  ;;  %v2074_v20 = vsub.f32 %v64_v7, %v86_v11  ;;  %v2076_v21 = vand.u32 4294901760, %v74_v12  ;;  %v574_v63 = vld [vmem:[#allocation7 + $0x38] sm:$0xff]  ;;  %v575_v8 = vld [vmem:[#allocation7 + $0x40] sm:$0xff]  ;;  %v576_v9 = vld [vmem:[#allocation7 + $0x48] sm:$0xff]  ;;  %s1946_s8 = scalar_lea.vmem %s1245_s7, 128  ;;  %p1951_p11 = scmp.lt.s32.totalorder %s1245_s7, %s1245_s7 }
  0x3c   :  { %1668 = vmatpush3.bf16.msra.mxu0 %v2066_v15  ;;  %v158_v22 = vand.u32 4294901760, %v2068_v16  ;;  %v165_v23 = vand.u32 4294901760, %v164_v17  ;;  %v2090_v31 = vsub.f32 %v2061_v10, %v591_v14  ;;  %v2101_v38 = vsub.f32 %v2063_v13, %v594_v25  ;;  %p1947_p10 = scmp.ne.s32.totalorder %s1245_s7, %s1946_s8  ;;  %p1952_p12 = scmp.lt.s32.totalorder %s1946_s8, %s1946_s8 }
  0x3d   :  { %v172_v24 = vand.u32 4294901760, %v2070_v18  ;;  %1669 = vmatprep.subr.bf16.mxu0 %v1979_v0  ;;  %v146_v26 = vsub.f32 %v74_v12, %v2076_v21  ;;  %v179_v27 = vand.u32 4294901760, %v2074_v20  ;;  %v597_v40 = vand.u32 4294901760, %v2092_v32 }
  0x3e   :  { %v159_v28 = vsub.f32 %v2068_v16, %v158_v22  ;;  %v166_v29 = vsub.f32 %v164_v17, %v165_v23  ;;  %v600_v41 = vand.u32 4294901760, %v2094_v33  ;;  %v1751_v45 = vpack.c.bf16 %v2101_v38, %v2090_v31  ;;  %p1953_p13 = por %p1952_p12, %p1951_p11 }
  0x3f   :  { %v173_v30 = vsub.f32 %v2070_v18, %v172_v24  ;;  %v147_v34 = vand.u32 4294901760, %v146_v26  ;;  %v180_v35 = vsub.f32 %v2074_v20, %v179_v27  ;;  %v2111_v47 = vsub.f32 %v2092_v32, %v597_v40 }
  0x40   :  { %1671 = vmatpush3.bf16.msra.mxu0 %v2072_v19  ;;  %v160_v36 = vand.u32 4294901760, %v159_v28  ;;  %v167_v37 = vand.u32 4294901760, %v166_v29  ;;  %v2116_v48 = vsub.f32 %v2094_v33, %v600_v41  ;;  %1752 = vmatpush3.bf16.msra.mxu1 %v1751_v45  ;;  %v1679_v51 = vpack.c.bf16 %v164_v17, %v2068_v16  ;;  %v577_v16 = vld [vmem:[#allocation7 + $0x50] sm:$0xff]  ;;  %v578_v17 = vld [vmem:[#allocation7 + $0x58] sm:$0xff]  ;;  %p1954_p0 = pnand %p1953_p13, %p1947_p10 }
  0x41   :  { %v148_v39 = vsub.f32 %v146_v26, %v147_v34  ;;  %1672 = vmatprep.subr.bf16.mxu0 %v1979_v0  ;;  %v174_v43 = vand.u32 4294901760, %v173_v30  ;;  %v181_v44 = vand.u32 4294901760, %v180_v35  ;;  %1753 = vmatprep.subr.bf16.mxu1 %v1979_v0  ;;  %v1682_v52 = vpack.c.bf16 %v2074_v20, %v2070_v18  ;;  %v581_v33 = vld [vmem:[#allocation7 + $0x70] sm:$0xff] }
  0x42   :  { %v1673_v42 = vpack.c.bf16 %v167_v37, %v160_v36  ;;  %v1754_v49 = vpack.c.bf16 %v2116_v48, %v2111_v47  ;;  %v1691_v53 = vpack.c.bf16 %v165_v23, %v158_v22  ;;  %v1694_v54 = vpack.c.bf16 %v179_v27, %v172_v24  ;;  %v579_v24 = vld [vmem:[#allocation7 + $0x60] sm:$0xff] }
  0x43   :  { %v149_v46 = vand.u32 4294901760, %v148_v39  ;;  %v1676_v50 = vpack.c.bf16 %v181_v44, %v174_v43  ;;  %v2154_v55 = vpack.c.bf16 %v594_v25, %v591_v14  ;;  %v603_v58 = vand.u32 4294901760, %v571_v56  ;;  %v580_v25 = vld [vmem:[#allocation7 + $0x68] sm:$0xff] }
  0x44   :  { %1755 = vmatpush3.bf16.msra.mxu1 %v1754_v49  ;;  %v606_v59 = vand.u32 4294901760, %v572_v57  ;;  %v609_v3 = vand.u32 4294901760, %v573_v62  ;;  %v612_v4 = vand.u32 4294901760, %v574_v63  ;;  %v2172_v5 = vpack.c.bf16 %v600_v41, %v597_v40 }
  0x45   :  { %1399 = vmatmul.mubr.f32.vlgmr.msra.gmra.mrb[0].mxu0 %v149_v46  ;;  %1756 = vmatprep.subr.bf16.mxu1 %v1979_v0  ;;  %v2162_v60 = vsub.f32 %v571_v56, %v603_v58  ;;  %v615_v11 = vand.u32 4294901760, %v575_v8  ;;  %v618_v12 = vand.u32 4294901760, %v576_v9  ;;  %v624_v20 = vand.u32 4294901760, %v578_v17 }
  0x46   :  { %1674 = vmatpush3.bf16.msra.mxu0 %v1673_v42  ;;  %1409 = vmatprep.mubr.msk.f32.mxu0 %vm1980_vm0, %v1981_v1  ;;  %v2164_v61 = vsub.f32 %v572_v57, %v606_v59  ;;  %v2174_v6 = vsub.f32 %v573_v62, %v609_v3  ;;  %v2176_v7 = vsub.f32 %v574_v63, %v612_v4  ;;  %v627_v27 = vand.u32 4294901760, %v579_v24 }
  0x47   :  { %1675 = vmatprep.subr.bf16.mxu0 %v1979_v0  ;;  %v2183_v13 = vpack.c.bf16 %v606_v59, %v603_v58  ;;  %v2185_v14 = vsub.f32 %v575_v8, %v615_v11  ;;  %v2198_v23 = vsub.f32 %v578_v17, %v624_v20  ;;  %v630_v28 = vand.u32 4294901760, %v580_v25 }
  0x48   :  { %v1757_v2 = vpack.c.bf16 %v2164_v61, %v2162_v60  ;;  %v1760_v10 = vpack.c.bf16 %v2176_v7, %v2174_v6  ;;  %v2205_v29 = vpack.c.bf16 %v618_v12, %v615_v11  ;;  %v2207_v30 = vsub.f32 %v579_v24, %v627_v27 }
  0x49   :  { %v2209_v32 = vsub.f32 %v580_v25, %v630_v28  ;;  %v633_v36 = vand.u32 4294901760, %v581_v33  ;;  %v2220_v43 = vpack.c.bf16 %v630_v28, %v627_v27  ;;  %v712_v45 = vand.u32 4294901760, %v2162_v60 }
  0x4a   :  { %1677 = vmatpush3.bf16.msra.mxu0 %v1676_v50  ;;  %1758 = vmatpush3.bf16.msra.mxu1 %v1757_v2  ;;  %v719_v46 = vand.u32 4294901760, %v2164_v61  ;;  %v740_v63 = vand.u32 4294901760, %v2185_v14  ;;  %v768_v17 = vand.u32 4294901760, %v2207_v30 }
  0x4b   :  { %1678 = vmatprep.subr.bf16.mxu0 %v1979_v0  ;;  %1759 = vmatprep.subr.bf16.mxu1 %v1979_v0  ;;  %v1769_v35 = vpack.c.bf16 %v2209_v32, %v2207_v30  ;;  %v781_v40 = vsub.f32 %v581_v33, %v633_v36  ;;  %v713_v49 = vsub.f32 %v2162_v60, %v712_v45 }
  0x4c   :  { %v720_v50 = vsub.f32 %v2164_v61, %v719_v46  ;;  %v741_v61 = vsub.f32 %v2185_v14, %v740_v63 }
  0x4d   :  { %1410 = vmatmul.mubr.f32.vlgmr.msra.gmra.mrb[0].mxu0 %v2076_v21  ;;  %v782_v25 = vand.u32 4294901760, %v781_v40 }
  0x4e   :  { %1680 = vmatpush3.bf16.msra.mxu0 %v1679_v51  ;;  %1420 = vmatprep.mubr.msk.f32.mxu0 %vm1980_vm0, %v1981_v1  ;;  %v714_v51 = vand.u32 4294901760, %v713_v49 }
  0x4f   :  { %1681 = vmatprep.subr.bf16.mxu0 %v1979_v0  ;;  %1761 = vmatpush3.bf16.msra.mxu1 %v1760_v10 }
  0x50   :  { %1762 = vmatprep.subr.bf16.mxu1 %v1979_v0 }
  0x52   :  { %1683 = vmatpush3.bf16.msra.mxu0 %v1682_v52  ;;  %v721_v52 = vand.u32 4294901760, %v720_v50 }
  0x53   :  { %1684 = vmatprep.subr.bf16.mxu0 %v1979_v0 }
  0x54   :  { %v2236_v56 = vpack.c.bf16 %v721_v52, %v714_v51  ;;  %v691_v52 = vand.u32 4294901760, %v2101_v38 }
  0x55   :  { %1421 = vmatmul.mubr.f32.vlgmr.msra.gmra.mrb[0].mxu0 %v146_v26 }
  0x56   :  { %1686 = vmatpush3.bf16.msra.mxu0 %v2066_v15  ;;  %1431 = vmatprep.mubr.msk.f32.mxu0 %vm1980_vm0, %v1981_v1 }
  0x57   :  { %1687 = vmatprep.subr.bf16.mxu0 %v1979_v0 }
  0x5a   :  { %1689 = vmatpush3.bf16.msra.mxu0 %v2072_v19 }
  0x5b   :  { %1690 = vmatprep.subr.bf16.mxu0 %v1979_v0 }
  0x5d   :  { %1432 = vmatmul.mubr.f32.vlgmr.msra.gmra.mrb[0].mxu0 %v147_v34  ;;  %v582_v34 = vld [vmem:[#allocation7 + $0x78] sm:$0xff] }
  0x5e   :  { %1692 = vmatpush3.bf16.msra.mxu0 %v1691_v53  ;;  %1442 = vmatprep.mubr.msk.f32.mxu0 %vm1980_vm0, %v1981_v1  ;;  %v636_v37 = vand.u32 4294901760, %v582_v34  ;;  %v726_v53 = vand.u32 4294901760, %v2174_v6 }
  0x5f   :  { %1693 = vmatprep.subr.bf16.mxu0 %v1979_v0 }
  0x60   :  { %v788_v41 = vsub.f32 %v582_v34, %v636_v37  ;;  %v2226_v44 = vpack.c.bf16 %v636_v37, %v633_v36  ;;  %v727_v57 = vsub.f32 %v2174_v6, %v726_v53  ;;  %v761_v6 = vand.u32 4294901760, %v2198_v23 }
  0x62   :  { %1695 = vmatpush3.bf16.msra.mxu0 %v1694_v54  ;;  %v1772_v42 = vpack.c.bf16 %v788_v41, %v781_v40  ;;  %v733_v54 = vand.u32 4294901760, %v2176_v7  ;;  %v728_v59 = vand.u32 4294901760, %v727_v57  ;;  %v762_v11 = vsub.f32 %v2198_v23, %v761_v6 }
  0x63   :  { %1696 = vmatprep.subr.bf16.mxu0 %v1979_v0 }
  0x64   :  { %v734_v58 = vsub.f32 %v2176_v7, %v733_v54  ;;  %v2264_v36 = vpack.c.bf16 %v733_v54, %v726_v53 }
  0x65   :  { %1443 = vmatmul.mubr.f32.vlgmr.msra.gmra.mrb[0].mxu0 %v2076_v21 }
  0x66   :  { %1698 = vmatpush3.bf16.msra.mxu0 %v2066_v15  ;;  %1453 = vmatprep.mubr.msk.f32.mxu0 %vm1980_vm0, %v1981_v1  ;;  %v2187_v15 = vsub.f32 %v576_v9, %v618_v12  ;;  %v735_v62 = vand.u32 4294901760, %v734_v58 }
  0x67   :  { %1699 = vmatprep.subr.bf16.mxu0 %v1979_v0 }
  0x68   :  { %v1763_v18 = vpack.c.bf16 %v2187_v15, %v2185_v14  ;;  %v747_v60 = vand.u32 4294901760, %v2187_v15  ;;  %v2242_v2 = vpack.c.bf16 %v735_v62, %v728_v59  ;;  %v775_v14 = vand.u32 4294901760, %v2209_v32 }
  0x69   :  { %v692_v59 = vsub.f32 %v2101_v38, %v691_v52  ;;  %v698_v62 = vand.u32 4294901760, %v2111_v47 }
  0x6a   :  { %1701 = vmatpush3.bf16.msra.mxu0 %v2072_v19  ;;  %v621_v19 = vand.u32 4294901760, %v577_v16  ;;  %1764 = vmatpush3.bf16.msra.mxu1 %v1763_v18  ;;  %v2266_v37 = vpack.c.bf16 %v747_v60, %v740_v63  ;;  %v705_v63 = vand.u32 4294901760, %v2116_v48 }
  0x6b   :  { %1702 = vmatprep.subr.bf16.mxu0 %v1979_v0  ;;  %1765 = vmatprep.subr.bf16.mxu1 %v1979_v0 }
  0x6c   :  { %v2196_v22 = vsub.f32 %v577_v16, %v621_v19  ;;  %v2216_v39 = vpack.c.bf16 %v624_v20, %v621_v19  ;;  %v763_v16 = vand.u32 4294901760, %v762_v11  ;;  %v776_v19 = vsub.f32 %v2209_v32, %v775_v14 }
  0x6d   :  { %1454 = vmatmul.mubr.f32.vlgmr.msra.gmra.mrb[0].mxu0 %v2076_v21  ;;  %v2194_v21 = vpack.c.bf16 %v612_v4, %v609_v3  ;;  %v748_v3 = vsub.f32 %v2187_v15, %v747_v60  ;;  %v742_v4 = vand.u32 4294901760, %v741_v61  ;;  %v769_v15 = vsub.f32 %v2207_v30, %v768_v17 }
  0x6e   :  { %1704 = vmatpush3.bf16.msra.mxu0 %v2154_v55  ;;  %1488 = vmatprep.mubr.msk.f32.mxu0 %vm1980_vm0, %v1981_v1  ;;  %v1766_v26 = vpack.c.bf16 %v2198_v23, %v2196_v22  ;;  %v754_v9 = vand.u32 4294901760, %v2196_v22  ;;  %v777_v24 = vand.u32 4294901760, %v776_v19  ;;  %v2270_v32 = vpack.c.bf16 %v775_v14, %v768_v17 }
  0x6f   :  { %1705 = vmatprep.subr.bf16.mxu0 %v1979_v0  ;;  %v749_v8 = vand.u32 4294901760, %v748_v3  ;;  %v770_v20 = vand.u32 4294901760, %v769_v15 }
  0x70   :  { %1767 = vmatpush3.bf16.msra.mxu1 %v1766_v26  ;;  %v755_v7 = vsub.f32 %v2196_v22, %v754_v9  ;;  %v789_v26 = vand.u32 4294901760, %v788_v41  ;;  %v783_v22 = vsub.f32 %v781_v40, %v782_v25  ;;  %v2268_v30 = vpack.c.bf16 %v761_v6, %v754_v9  ;;  %v1254_v40 = vld [vmem:[%s2374_s2] ss:$0 sm:$0xff] }
  0x71   :  { %1768 = vmatprep.subr.bf16.mxu1 %v1979_v0  ;;  %v2248_v10 = vpack.c.bf16 %v749_v8, %v742_v4  ;;  %v2258_v27 = vpack.c.bf16 %v777_v24, %v770_v20  ;;  %v693_v4 = vand.u32 4294901760, %v692_v59  ;;  %v699_v8 = vsub.f32 %v2111_v47, %v698_v62 }
  0x72   :  { %1707 = vmatpush3.bf16.msra.mxu0 %v2172_v5  ;;  %v756_v12 = vand.u32 4294901760, %v755_v7  ;;  %v790_v23 = vsub.f32 %v788_v41, %v789_v26  ;;  %v784_v28 = vand.u32 4294901760, %v783_v22  ;;  %v706_v9 = vsub.f32 %v2116_v48, %v705_v63 }
  0x73   :  { %1708 = vmatprep.subr.bf16.mxu0 %v1979_v0  ;;  %v700_v7 = vand.u32 4294901760, %v699_v8 }
  0x74   :  { %1770 = vmatpush3.bf16.msra.mxu1 %v1769_v35  ;;  %v2254_v18 = vpack.c.bf16 %v763_v16, %v756_v12  ;;  %v791_v33 = vand.u32 4294901760, %v790_v23  ;;  %v2262_v35 = vpack.c.bf16 %v719_v46, %v712_v45  ;;  %v684_v46 = vand.u32 4294901760, %v2090_v31 }
  0x75   :  { %1771 = vmatprep.subr.bf16.mxu1 %v1979_v0  ;;  %v707_v11 = vand.u32 4294901760, %v706_v9 }
  0x76   :  { %1710 = vmatpush3.bf16.msra.mxu0 %v2183_v13  ;;  %v2260_v34 = vpack.c.bf16 %v791_v33, %v784_v28  ;;  %v685_v57 = vsub.f32 %v2090_v31, %v684_v46  ;;  %v1799_v48 = vpack.c.bf16 %v691_v52, %v684_v46 }
  0x77   :  { %1711 = vmatprep.subr.bf16.mxu0 %v1979_v0  ;;  %v1730_v47 = vpack.c.bf16 %v707_v11, %v700_v7 }
  0x78   :  { %1773 = vmatpush3.bf16.msra.mxu1 %v1772_v42  ;;  %v2272_v42 = vpack.c.bf16 %v789_v26, %v782_v25  ;;  %v686_v3 = vand.u32 4294901760, %v685_v57 }
  0x79   :  { %1774 = vmatprep.subr.bf16.mxu1 %v1979_v0 }
  0x7a   :  { %1713 = vmatpush3.bf16.msra.mxu0 %v2194_v21  ;;  %v1727_v38 = vpack.c.bf16 %v693_v4, %v686_v3 }
  0x7b   :  { %1714 = vmatprep.subr.bf16.mxu0 %v1979_v0 }
  0x7e   :  { %1716 = vmatpush3.bf16.msra.mxu0 %v2205_v29 }
  0x7f   :  { %1717 = vmatprep.subr.bf16.mxu0 %v1979_v0 }
  0x82   :  { %1719 = vmatpush3.bf16.msra.mxu0 %v2216_v39 }
  0x83   :  { %1720 = vmatprep.subr.bf16.mxu0 %v1979_v0 }
  0x86   :  { %1722 = vmatpush3.bf16.msra.mxu0 %v2220_v43 }
  0x87   :  { %1723 = vmatprep.subr.bf16.mxu0 %v1979_v0 }
  0x8a   :  { %1725 = vmatpush3.bf16.msra.mxu0 %v2226_v44 }
  0x8b   :  { %1726 = vmatprep.subr.bf16.mxu0 %v1979_v0 }
 0x140   :  { %v557_v41 = vpop.f32.mrb[0].mxu0 }
 0x141   :  { %v1846_v49 = vadd.f32 %v1254_v40, %v557_v41  ;;  %v1455_v50 = vpop.f32.mrb[1].mxu0 }
 0x143   :  { %v562_v51 = vmin.f32 %v1846_v49, 0.0  ;;  %vm561_vm2 = vcmp.gt.f32.partialorder %v1846_v49, 0.0 }
 0x145   :  { %v563_v45 = vmul.f32 1.442695, %v562_v51 }
 0x147   :  { %1876 = vpow2.f32 %v563_v45 }
 0x151   :  { %v1877_v53 = vpop.eup %1876 }
 0x152   :  { %v1255_v54 = vadd.f32 -1.0, %v1877_v53 }
 0x154   :  { %v566_v58 = vsel %vm561_vm2, %v1846_v49, %v1255_v54 }
 0x155   :  { %v2283_v60 = vand.u32 4294901760, %v566_v58 }
 0x157   :  { %v672_v61 = vsub.f32 %v566_v58, %v2283_v60 }
 0x159   :  { %v673_v6 = vand.u32 4294901760, %v672_v61  ;;  %1559 = vmatmul.mubr.f32.vlgmr.msra.gmra.mrb[0].mxu1 %v672_v61 }
 0x15a   :  { %1776 = vmatpush3.bf16.msra.mxu1 %v2154_v55  ;;  %1593 = vmatprep.mubr.msk.f32.mxu1 %vm1980_vm0, %v1981_v1 }
 0x15b   :  { %1777 = vmatprep.subr.bf16.mxu1 %v1979_v0  ;;  %v674_v31 = vsub.f32 %v672_v61, %v673_v6 }
 0x15d   :  { %v675_v12 = vand.u32 4294901760, %v674_v31 }
 0x15e   :  { %1779 = vmatpush3.bf16.msra.mxu1 %v2172_v5 }
 0x15f   :  { %1489 = vmatmul.mubr.f32.vlgmr.msra.gmra.mrb[2].mxu0 %v675_v12  ;;  %1780 = vmatprep.subr.bf16.mxu1 %v1979_v0 }
 0x160   :  { %1728 = vmatpush3.bf16.msra.mxu0 %v1727_v38  ;;  %1523 = vmatprep.mubr.msk.f32.mxu0 %vm1980_vm0, %v1981_v1 }
 0x161   :  { %1729 = vmatprep.subr.bf16.mxu0 %v1979_v0 }
 0x162   :  { %1782 = vmatpush3.bf16.msra.mxu1 %v2183_v13 }
 0x163   :  { %1783 = vmatprep.subr.bf16.mxu1 %v1979_v0 }
 0x164   :  { %1731 = vmatpush3.bf16.msra.mxu0 %v1730_v47 }
 0x165   :  { %1732 = vmatprep.subr.bf16.mxu0 %v1979_v0 }
 0x166   :  { %1785 = vmatpush3.bf16.msra.mxu1 %v2194_v21 }
 0x167   :  { %1786 = vmatprep.subr.bf16.mxu1 %v1979_v0 }
 0x168   :  { %1734 = vmatpush3.bf16.msra.mxu0 %v2236_v56  ;;  %v1802_v56 = vpack.c.bf16 %v705_v63, %v698_v62 }
 0x169   :  { %1735 = vmatprep.subr.bf16.mxu0 %v1979_v0 }
 0x16a   :  { %1788 = vmatpush3.bf16.msra.mxu1 %v2205_v29 }
 0x16b   :  { %1789 = vmatprep.subr.bf16.mxu1 %v1979_v0 }
 0x16c   :  { %1737 = vmatpush3.bf16.msra.mxu0 %v2242_v2 }
 0x16d   :  { %1738 = vmatprep.subr.bf16.mxu0 %v1979_v0 }
 0x16e   :  { %1791 = vmatpush3.bf16.msra.mxu1 %v2216_v39 }
 0x16f   :  { %1792 = vmatprep.subr.bf16.mxu1 %v1979_v0 }
 0x170   :  { %1740 = vmatpush3.bf16.msra.mxu0 %v2248_v10 }
 0x171   :  { %1741 = vmatprep.subr.bf16.mxu0 %v1979_v0 }
 0x172   :  { %1794 = vmatpush3.bf16.msra.mxu1 %v2220_v43 }
 0x173   :  { %1795 = vmatprep.subr.bf16.mxu1 %v1979_v0 }
 0x174   :  { %1743 = vmatpush3.bf16.msra.mxu0 %v2254_v18 }
 0x175   :  { %1744 = vmatprep.subr.bf16.mxu0 %v1979_v0 }
 0x176   :  { %1797 = vmatpush3.bf16.msra.mxu1 %v2226_v44 }
 0x177   :  { %1798 = vmatprep.subr.bf16.mxu1 %v1979_v0 }
 0x178   :  { %1746 = vmatpush3.bf16.msra.mxu0 %v2258_v27 }
 0x179   :  { %1594 = vmatmul.mubr.f32.vlgmr.msra.gmra.mrb[0].mxu1 %v673_v6  ;;  %1747 = vmatprep.subr.bf16.mxu0 %v1979_v0 }
 0x17a   :  { %1800 = vmatpush3.bf16.msra.mxu1 %v1799_v48  ;;  %1628 = vmatprep.mubr.msk.f32.mxu1 %vm1980_vm0, %v1981_v1 }
 0x17b   :  { %1801 = vmatprep.subr.bf16.mxu1 %v1979_v0 }
 0x17c   :  { %1749 = vmatpush3.bf16.msra.mxu0 %v2260_v34 }
 0x17e   :  { %1803 = vmatpush3.bf16.msra.mxu1 %v1802_v56 }
 0x17f   :  { %1524 = vmatmul.mubr.f32.vlgmr.msra.gmra.mrb[2].mxu0 %v2283_v60  ;;  %1804 = vmatprep.subr.bf16.mxu1 %v1979_v0 }
 0x182   :  { %1806 = vmatpush3.bf16.msra.mxu1 %v2262_v35 }
 0x183   :  { %1807 = vmatprep.subr.bf16.mxu1 %v1979_v0 }
 0x186   :  { %1809 = vmatpush3.bf16.msra.mxu1 %v2264_v36 }
 0x187   :  { %1810 = vmatprep.subr.bf16.mxu1 %v1979_v0 }
 0x18a   :  { %1812 = vmatpush3.bf16.msra.mxu1 %v2266_v37 }
 0x18b   :  { %1813 = vmatprep.subr.bf16.mxu1 %v1979_v0 }
 0x18e   :  { %1815 = vmatpush3.bf16.msra.mxu1 %v2268_v30 }
 0x18f   :  { %1816 = vmatprep.subr.bf16.mxu1 %v1979_v0 }
 0x192   :  { %1818 = vmatpush3.bf16.msra.mxu1 %v2270_v32 }
 0x193   :  { %1819 = vmatprep.subr.bf16.mxu1 %v1979_v0 }
 0x196   :  { %1821 = vmatpush3.bf16.msra.mxu1 %v2272_v42 }
 0x197   :  { %1822 = vmatprep.subr.bf16.mxu1 %v1979_v0 }
 0x199   :  { %1629 = vmatmul.mubr.f32.vlgmr.msra.gmra.mrb[0].mxu1 %v2283_v60 }
 0x19a   :  { %1824 = vmatpush3.bf16.msra.mxu1 %v2154_v55  ;;  %1663 = vmatprep.mubr.msk.f32.mxu1 %vm1980_vm0, %v1981_v1 }
 0x19b   :  { %1825 = vmatprep.subr.bf16.mxu1 %v1979_v0 }
 0x19e   :  { %1827 = vmatpush3.bf16.msra.mxu1 %v2172_v5  ;;  %v1256_v5 = vld [vmem:[%s2376_s4] ss:$0 sm:$0xff] }
 0x19f   :  { %1828 = vmatprep.subr.bf16.mxu1 %v1979_v0 }
 0x1a2   :  { %1830 = vmatpush3.bf16.msra.mxu1 %v2183_v13 }
 0x1a3   :  { %1831 = vmatprep.subr.bf16.mxu1 %v1979_v0 }
 0x1a6   :  { %1833 = vmatpush3.bf16.msra.mxu1 %v2194_v21 }
 0x1a7   :  { %1834 = vmatprep.subr.bf16.mxu1 %v1979_v0 }
 0x1aa   :  { %1836 = vmatpush3.bf16.msra.mxu1 %v2205_v29 }
 0x1ab   :  { %1837 = vmatprep.subr.bf16.mxu1 %v1979_v0 }
 0x1ae   :  { %1839 = vmatpush3.bf16.msra.mxu1 %v2216_v39 }
 0x1af   :  { %1840 = vmatprep.subr.bf16.mxu1 %v1979_v0 }
 0x1b2   :  { %1842 = vmatpush3.bf16.msra.mxu1 %v2220_v43 }
 0x1b3   :  { %1843 = vmatprep.subr.bf16.mxu1 %v1979_v0 }
 0x1b6   :  { %1845 = vmatpush3.bf16.msra.mxu1 %v2226_v44 }
 0x1b9   :  { %1664 = vmatmul.mubr.f32.vlgmr.msra.gmra.mrb[0].mxu1 %v2283_v60 }
 0x252   :  { %v828_v1 = vpop.f32.mrb[2].mxu0 }
 0x253   :  { %v1525_v55 = vpop.f32.mrb[3].mxu0  ;;  %v1847_v13 = vadd.f32 %v1256_v5, %v828_v1 }
 0x28c   :  { %v1227_v21 = vpop.f32.mrb[0].mxu1 }
 0x28d   :  { %v1848_v29 = vadd.f32 %v1847_v13, %v1227_v21  ;;  %v1665_v39 = vpop.f32.mrb[1].mxu1 }
 0x28f   :  { %v1232_v2 = vmin.f32 %v1848_v29, 0.0  ;;  %vm1231_vm3 = vcmp.gt.f32.partialorder %v1848_v29, 0.0 }
 0x291   :  { %v1233_v10 = vmul.f32 1.442695, %v1232_v2 }
 0x293   :  { %1878 = vpow2.f32 %v1233_v10 }
 0x29d   :  { %v1879_v0 = vpop.eup %1878 }
 0x29e   :  { %v1257_v43 = vadd.f32 -1.0, %v1879_v0 }
 0x2a0   :  { %v1236_v44 = vsel %vm1231_vm3, %v1848_v29, %v1257_v43 }
 0x2a1   :  { %1237 = vst [vmem:[#allocation8] sm:$0xff] %v1236_v44 }
 0x2a2   :  { %1957 = shalt.err (!%p1954_p0)
}
 0x2a3   :  { %s1958_s10 = scalar_lea.hbm %s2377_s5, 128 }
 0x2a4   :  { %p1959_p1 = scmp.ne.s32.totalorder %s2377_s5, %s1958_s10  ;;  %p1962_p2 = scmp.lt.u32.totalorder %s1958_s10, %s2377_s5 }
 0x2a6   :  { %p1964_p3 = pnand %p1962_p2, %p1959_p1 }
 0x2a8   :  { %1967 = shalt.err (!%p1964_p3)
}
 0x2a9   :  { %1247 = dma.vmem_to_hbm [thread:$0]  %s1245_s7, 128, %s2377_s5, [#allocation4]  }
 0x2aa   :  { %1972 = dma.done.wait [#allocation4], 128  }
 0x2ab   :  { %1973 = vsyncadd [#allocation4], 4294967168 }
 0x2ac   :  { %1251 = vsyncpa [#allocation3], 1 }
 0x2ad   :  { %1252 = vsyncpa [#allocation6], 1 }
 0x2ae   :  { %1253 = vsyncpa [#allocation4], 1 }

</bundles_post_ra>
